<compile_context>
chip_gen: v7x
topology: tpu7x:2x2x1
jax: 0.10.0
libtpu: 0.0.40
codegen_flags: <defaults>
</compile_context>

<pallas_src>
import numpy as np
import jax
import jax.numpy as jnp
from jax import lax
from jax.experimental import pallas as pl
from jax.experimental.pallas import tpu as pltpu


def contracting_block(x, w1, b1, w2, b2, gamma, beta, run_mean, run_var,
                      *, eps=1e-5, use_bn=True, negative_slope=0.2):
    """Forward pass of ContractingBlock (inference mode).

    x : (B, C_in, H, W) float32 (NCHW, same as the PyTorch module)
    w1: (2*C_in, C_in, 3, 3),  b1: (2*C_in,)
    w2: (2*C_in, 2*C_in, 3, 3), b2: (2*C_in,)
    gamma/beta/run_mean/run_var: (2*C_in,) BatchNorm2d parameters / running stats
    returns: (B, 2*C_in, H//2, W//2)
    """
    B, C_in, H, W = x.shape
    C_mid = w1.shape[0]
    assert H % 2 == 0 and W % 2 == 0
    HW = H * W
    Hp, Wp = H // 2, W // 2
    HWp = Hp * Wp
    # Zero padding (in flattened pixel space) on each side of the image; a multiple of
    # 128 so the in-kernel scratch writes land on lane-aligned boundaries.
    PAD = ((W + 1 + 127) // 128) * 128
    Lb = 2 * PAD + HW
    dtype = x.dtype

    # ---------------- wrapper-side prep: reshapes / pads only, NO transposes --------
    xf = jnp.pad(x.reshape(B, C_in, HW).astype(jnp.float32),
                 ((0, 0), (0, 0), (PAD, PAD)))                      # (B, C_in, Lb)

    # Conv weights -> tap-major (9, C_out, C_in); tap t = dy*3 + dx (tiny tensors).
    w1_t = jnp.transpose(w1, (2, 3, 0, 1)).reshape(9, C_mid, C_in).astype(jnp.float32)
    w2_t = jnp.transpose(w2, (2, 3, 0, 1)).reshape(9, C_mid, C_mid).astype(jnp.float32)

    # Fold conv bias + inference-mode BatchNorm into one per-channel affine.
    if use_bn:
        a = gamma / jnp.sqrt(run_var + eps)
        c = beta - a * run_mean
    else:
        a = jnp.ones((C_mid,), jnp.float32)
        c = jnp.zeros((C_mid,), jnp.float32)
    scale = a.reshape(C_mid, 1).astype(jnp.float32)
    shift1 = (a * b1 + c).reshape(C_mid, 1).astype(jnp.float32)
    shift2 = (a * b2 + c).reshape(C_mid, 1).astype(jnp.float32)

    # Column-wrap masks for the dx=0 / dx=2 taps (over the flattened pixel axis).
    wpos = np.arange(HW) % W
    masks = jnp.asarray(np.stack([(wpos != 0), (wpos != W - 1)]).astype(np.float32))

    # 0/1 selection matrix picking the (even row, even col) lanes for the 2x2 maxpool.
    n_pool = HW - W - 1
    spool_np = np.zeros((n_pool, HWp), np.float32)
    for i in range(Hp):
        for j in range(Wp):
            spool_np[2 * i * W + 2 * j, i * Wp + j] = 1.0
    spool = jnp.asarray(spool_np)

    def kernel(x_ref, w1_ref, w2_ref, scale_ref, sh1_ref, sh2_ref,
               mask_ref, spool_ref, o_ref, buf_ref):
        def conv3x3(src_ref, w_ref):
            acc = jnp.zeros((C_mid, HW), jnp.float32)
            for dy in range(3):
                for dx in range(3):
                    start = PAD + (dy - 1) * W + (dx - 1)
                    tap = src_ref[:, start:start + HW]
                    if dx == 0:
                        tap = tap * mask_ref[0:1, :]
                    elif dx == 2:
                        tap = tap * mask_ref[1:2, :]
                    acc = acc + jnp.dot(w_ref[dy * 3 + dx], tap,
                                        preferred_element_type=jnp.float32)
            return acc

        # conv1 (+ bias & BN folded into scale/shift) + LeakyReLU(0.2)
        z1 = conv3x3(x_ref, w1_ref) * scale_ref[...] + sh1_ref[...]
        h1 = jnp.maximum(z1, negative_slope * z1)

        # Stage h1 in the zero-padded VMEM scratch so conv2 can read shifted taps.
        buf_ref[...] = jnp.zeros_like(buf_ref)
        buf_ref[:, PAD:PAD + HW] = h1

        # conv2 (+ folded bias/BN) + LeakyReLU(0.2)
        z2 = conv3x3(buf_ref, w2_ref) * scale_ref[...] + sh2_ref[...]
        h2 = jnp.maximum(z2, negative_slope * z2)

        # 2x2 / stride-2 max pool: stage h2, max of the 4 shifted windows, then the
        # selection matmul gathers the even-row/even-col lanes into (C_mid, HWp).
        buf_ref[:, PAD:PAD + HW] = h2
        m = jnp.maximum(
            jnp.maximum(buf_ref[:, PAD:PAD + n_pool],
                        buf_ref[:, PAD + 1:PAD + 1 + n_pool]),
            jnp.maximum(buf_ref[:, PAD + W:PAD + W + n_pool],
                        buf_ref[:, PAD + W + 1:PAD + W + 1 + n_pool]))
        o_ref[...] = jnp.dot(m, spool_ref[...],
                             preferred_element_type=jnp.float32).astype(o_ref.dtype)

    out_flat = pl.pallas_call(
        kernel,
        out_shape=jax.ShapeDtypeStruct((B, C_mid, HWp), dtype),
        grid_spec=pltpu.PrefetchScalarGridSpec(
            num_scalar_prefetch=0,
            grid=(B,),
            in_specs=[
                pl.BlockSpec((None, C_in, Lb), lambda b: (b, 0, 0)),     # image b
                pl.BlockSpec((9, C_mid, C_in), lambda b: (0, 0, 0)),     # conv1 taps
                pl.BlockSpec((9, C_mid, C_mid), lambda b: (0, 0, 0)),    # conv2 taps
                pl.BlockSpec((C_mid, 1), lambda b: (0, 0)),              # BN scale
                pl.BlockSpec((C_mid, 1), lambda b: (0, 0)),              # shift1
                pl.BlockSpec((C_mid, 1), lambda b: (0, 0)),              # shift2
                pl.BlockSpec((2, HW), lambda b: (0, 0)),                 # wrap masks
                pl.BlockSpec((n_pool, HWp), lambda b: (0, 0)),           # pool select
            ],
            out_specs=pl.BlockSpec((None, C_mid, HWp), lambda b: (b, 0, 0)),
            scratch_shapes=[pltpu.VMEM((C_mid, Lb), jnp.float32)],
        ),
        compiler_params=pltpu.CompilerParams(
            dimension_semantics=("parallel",)),
    )(xf, w1_t, w2_t, scale, shift1, shift2, masks, spool)

    return out_flat.reshape(B, C_mid, Hp, Wp)


if __name__ == "__main__":
    key = jax.random.PRNGKey(0)
    ks = jax.random.split(key, 9)

    B, C_in, H, W = 2, 4, 16, 16
    C_mid = 2 * C_in

    x = jax.random.normal(ks[0], (B, C_in, H, W), dtype=jnp.float32)

    # torch.nn.Conv2d-style init: uniform +/- 1/sqrt(fan_in).
    bound1 = 1.0 / np.sqrt(C_in * 9)
    w1 = jax.random.uniform(ks[1], (C_mid, C_in, 3, 3), minval=-bound1, maxval=bound1)
    b1 = jax.random.uniform(ks[2], (C_mid,), minval=-bound1, maxval=bound1)
    bound2 = 1.0 / np.sqrt(C_mid * 9)
    w2 = jax.random.uniform(ks[3], (C_mid, C_mid, 3, 3), minval=-bound2, maxval=bound2)
    b2 = jax.random.uniform(ks[4], (C_mid,), minval=-bound2, maxval=bound2)

    # Non-trivial BatchNorm parameters / running statistics (inference mode).
    gamma = jax.random.uniform(ks[5], (C_mid,), minval=0.5, maxval=1.5)
    beta = 0.1 * jax.random.normal(ks[6], (C_mid,))
    run_mean = 0.1 * jax.random.normal(ks[7], (C_mid,))
    run_var = jax.random.uniform(ks[8], (C_mid,), minval=0.5, maxval=1.5)

    y = contracting_block(x, w1, b1, w2, b2, gamma, beta, run_mean, run_var)
    jax.block_until_ready(y)

    # ------------------ pure-JAX reference (same inference-mode semantics) ----------
    def conv(z, w, b):
        out = lax.conv_general_dilated(
            z, w, window_strides=(1, 1), padding="SAME",
            dimension_numbers=("NCHW", "OIHW", "NCHW"),
            precision=lax.Precision.HIGHEST)
        return out + b[None, :, None, None]

    def bn(z):
        inv = 1.0 / jnp.sqrt(run_var + 1e-5)
        return ((gamma * inv)[None, :, None, None] * (z - run_mean[None, :, None, None])
                + beta[None, :, None, None])

    r = conv(x, w1, b1)
    r = bn(r)
    r = jnp.maximum(r, 0.2 * r)
    r = conv(r, w2, b2)
    r = bn(r)
    r = jnp.maximum(r, 0.2 * r)
    r = lax.reduce_window(r, -jnp.inf, lax.max,
                          window_dimensions=(1, 1, 2, 2),
                          window_strides=(1, 1, 2, 2), padding="VALID")

    assert y.shape == (B, C_mid, H // 2, W // 2)
    assert jnp.allclose(y, r, atol=5e-3, rtol=5e-3), float(jnp.max(jnp.abs(y - r)))
    print("KERNEL_OK")
</pallas_src>

<mosaic_0001>
module attributes {stable_mosaic.version = 11 : i64} {
  func.func @kernel(%arg0: i32, %arg1: memref<1x4x512xf32, #tpu.memory_space<vmem>>, %arg2: memref<9x8x4xf32, #tpu.memory_space<vmem>>, %arg3: memref<9x8x8xf32, #tpu.memory_space<vmem>>, %arg4: memref<8x1xf32, #tpu.memory_space<vmem>>, %arg5: memref<8x1xf32, #tpu.memory_space<vmem>>, %arg6: memref<8x1xf32, #tpu.memory_space<vmem>>, %arg7: memref<2x256xf32, #tpu.memory_space<vmem>>, %arg8: memref<239x64xf32, #tpu.memory_space<vmem>>, %arg9: memref<1x8x64xf32, #tpu.memory_space<vmem>>, %arg10: memref<8x512xf32, #tpu.memory_space<vmem>>) attributes {dimension_semantics = [#tpu.dimension_semantics<parallel>], iteration_bounds = array<i64: 2>, scalar_prefetch = 0 : i64, scratch_operands = 1 : i64, tpu.core_type = #tpu.core_type<tc>, window_params = [{transform_indices = @transform_0, window_bounds = array<i64: 1, 4, 512>}, {pipeline_mode = #tpu.pipeline_mode<synchronous>, transform_indices = @transform_1, window_bounds = array<i64: 9, 8, 4>}, {pipeline_mode = #tpu.pipeline_mode<synchronous>, transform_indices = @transform_2, window_bounds = array<i64: 9, 8, 8>}, {pipeline_mode = #tpu.pipeline_mode<synchronous>, transform_indices = @transform_3, window_bounds = array<i64: 8, 1>}, {pipeline_mode = #tpu.pipeline_mode<synchronous>, transform_indices = @transform_4, window_bounds = array<i64: 8, 1>}, {pipeline_mode = #tpu.pipeline_mode<synchronous>, transform_indices = @transform_5, window_bounds = array<i64: 8, 1>}, {pipeline_mode = #tpu.pipeline_mode<synchronous>, transform_indices = @transform_6, window_bounds = array<i64: 2, 256>}, {pipeline_mode = #tpu.pipeline_mode<synchronous>, transform_indices = @transform_7, window_bounds = array<i64: 239, 64>}, {transform_indices = @transform_8, window_bounds = array<i64: 1, 8, 64>}]} {
    %cst = arith.constant 0.000000e+00 : f32
    %0 = vector.broadcast %cst : f32 to vector<8x256xf32>
    %c0 = arith.constant 0 : index
    %c0_0 = arith.constant 0 : index
    %c111 = arith.constant 111 : index
    %1 = vector.load %arg1[%c0, %c0_0, %c111] : memref<1x4x512xf32, #tpu.memory_space<vmem>>, vector<1x4x256xf32>
    %2 = vector.shape_cast %1 : vector<1x4x256xf32> to vector<4x256xf32>
    %c0_1 = arith.constant 0 : index
    %c0_2 = arith.constant 0 : index
    %3 = vector.load %arg7[%c0_1, %c0_2] : memref<2x256xf32, #tpu.memory_space<vmem>>, vector<1x256xf32>
    %4 = vector.broadcast %3 : vector<1x256xf32> to vector<4x256xf32>
    %5 = arith.mulf %2, %4 : vector<4x256xf32>
    %c0_3 = arith.constant 0 : index
    %c0_4 = arith.constant 0 : index
    %c0_5 = arith.constant 0 : index
    %6 = vector.load %arg2[%c0_3, %c0_4, %c0_5] : memref<9x8x4xf32, #tpu.memory_space<vmem>>, vector<1x8x4xf32>
    %7 = vector.shape_cast %6 : vector<1x8x4xf32> to vector<8x4xf32>
    %cst_6 = arith.constant dense<0.000000e+00> : vector<8x256xf32>
    %8 = tpu.matmul %7, %5, %cst_6 {dimension_numbers = #tpu.dot_dimension_numbers<[1], [0], [0], [1], [0, 0, 1, 1], [], []>} : vector<8x4xf32>, vector<4x256xf32>, vector<8x256xf32> -> vector<8x256xf32>
    %9 = arith.addf %0, %8 : vector<8x256xf32>
    %c0_7 = arith.constant 0 : index
    %c0_8 = arith.constant 0 : index
    %c112 = arith.constant 112 : index
    %10 = vector.load %arg1[%c0_7, %c0_8, %c112] : memref<1x4x512xf32, #tpu.memory_space<vmem>>, vector<1x4x256xf32>
    %11 = vector.shape_cast %10 : vector<1x4x256xf32> to vector<4x256xf32>
    %c1 = arith.constant 1 : index
    %c0_9 = arith.constant 0 : index
    %c0_10 = arith.constant 0 : index
    %12 = vector.load %arg2[%c1, %c0_9, %c0_10] : memref<9x8x4xf32, #tpu.memory_space<vmem>>, vector<1x8x4xf32>
    %13 = vector.shape_cast %12 : vector<1x8x4xf32> to vector<8x4xf32>
    %cst_11 = arith.constant dense<0.000000e+00> : vector<8x256xf32>
    %14 = tpu.matmul %13, %11, %cst_11 {dimension_numbers = #tpu.dot_dimension_numbers<[1], [0], [0], [1], [0, 0, 1, 1], [], []>} : vector<8x4xf32>, vector<4x256xf32>, vector<8x256xf32> -> vector<8x256xf32>
    %15 = arith.addf %9, %14 : vector<8x256xf32>
    %c0_12 = arith.constant 0 : index
    %c0_13 = arith.constant 0 : index
    %c113 = arith.constant 113 : index
    %16 = vector.load %arg1[%c0_12, %c0_13, %c113] : memref<1x4x512xf32, #tpu.memory_space<vmem>>, vector<1x4x256xf32>
    %17 = vector.shape_cast %16 : vector<1x4x256xf32> to vector<4x256xf32>
    %c1_14 = arith.constant 1 : index
    %c0_15 = arith.constant 0 : index
    %18 = vector.load %arg7[%c1_14, %c0_15] : memref<2x256xf32, #tpu.memory_space<vmem>>, vector<1x256xf32>
    %19 = vector.broadcast %18 : vector<1x256xf32> to vector<4x256xf32>
    %20 = arith.mulf %17, %19 : vector<4x256xf32>
    %c2 = arith.constant 2 : index
    %c0_16 = arith.constant 0 : index
    %c0_17 = arith.constant 0 : index
    %21 = vector.load %arg2[%c2, %c0_16, %c0_17] : memref<9x8x4xf32, #tpu.memory_space<vmem>>, vector<1x8x4xf32>
    %22 = vector.shape_cast %21 : vector<1x8x4xf32> to vector<8x4xf32>
    %cst_18 = arith.constant dense<0.000000e+00> : vector<8x256xf32>
    %23 = tpu.matmul %22, %20, %cst_18 {dimension_numbers = #tpu.dot_dimension_numbers<[1], [0], [0], [1], [0, 0, 1, 1], [], []>} : vector<8x4xf32>, vector<4x256xf32>, vector<8x256xf32> -> vector<8x256xf32>
    %24 = arith.addf %15, %23 : vector<8x256xf32>
    %c0_19 = arith.constant 0 : index
    %c0_20 = arith.constant 0 : index
    %c127 = arith.constant 127 : index
    %25 = vector.load %arg1[%c0_19, %c0_20, %c127] : memref<1x4x512xf32, #tpu.memory_space<vmem>>, vector<1x4x256xf32>
    %26 = vector.shape_cast %25 : vector<1x4x256xf32> to vector<4x256xf32>
    %c0_21 = arith.constant 0 : index
    %c0_22 = arith.constant 0 : index
    %27 = vector.load %arg7[%c0_21, %c0_22] : memref<2x256xf32, #tpu.memory_space<vmem>>, vector<1x256xf32>
    %28 = vector.broadcast %27 : vector<1x256xf32> to vector<4x256xf32>
    %29 = arith.mulf %26, %28 : vector<4x256xf32>
    %c3 = arith.constant 3 : index
    %c0_23 = arith.constant 0 : index
    %c0_24 = arith.constant 0 : index
    %30 = vector.load %arg2[%c3, %c0_23, %c0_24] : memref<9x8x4xf32, #tpu.memory_space<vmem>>, vector<1x8x4xf32>
    %31 = vector.shape_cast %30 : vector<1x8x4xf32> to vector<8x4xf32>
    %cst_25 = arith.constant dense<0.000000e+00> : vector<8x256xf32>
    %32 = tpu.matmul %31, %29, %cst_25 {dimension_numbers = #tpu.dot_dimension_numbers<[1], [0], [0], [1], [0, 0, 1, 1], [], []>} : vector<8x4xf32>, vector<4x256xf32>, vector<8x256xf32> -> vector<8x256xf32>
    %33 = arith.addf %24, %32 : vector<8x256xf32>
    %c0_26 = arith.constant 0 : index
    %c0_27 = arith.constant 0 : index
    %c128 = arith.constant 128 : index
    %34 = vector.load %arg1[%c0_26, %c0_27, %c128] : memref<1x4x512xf32, #tpu.memory_space<vmem>>, vector<1x4x256xf32>
    %35 = vector.shape_cast %34 : vector<1x4x256xf32> to vector<4x256xf32>
    %c4 = arith.constant 4 : index
    %c0_28 = arith.constant 0 : index
    %c0_29 = arith.constant 0 : index
    %36 = vector.load %arg2[%c4, %c0_28, %c0_29] : memref<9x8x4xf32, #tpu.memory_space<vmem>>, vector<1x8x4xf32>
    %37 = vector.shape_cast %36 : vector<1x8x4xf32> to vector<8x4xf32>
    %cst_30 = arith.constant dense<0.000000e+00> : vector<8x256xf32>
    %38 = tpu.matmul %37, %35, %cst_30 {dimension_numbers = #tpu.dot_dimension_numbers<[1], [0], [0], [1], [0, 0, 1, 1], [], []>} : vector<8x4xf32>, vector<4x256xf32>, vector<8x256xf32> -> vector<8x256xf32>
    %39 = arith.addf %33, %38 : vector<8x256xf32>
    %c0_31 = arith.constant 0 : index
    %c0_32 = arith.constant 0 : index
    %c129 = arith.constant 129 : index
    %40 = vector.load %arg1[%c0_31, %c0_32, %c129] : memref<1x4x512xf32, #tpu.memory_space<vmem>>, vector<1x4x256xf32>
    %41 = vector.shape_cast %40 : vector<1x4x256xf32> to vector<4x256xf32>
    %c1_33 = arith.constant 1 : index
    %c0_34 = arith.constant 0 : index
    %42 = vector.load %arg7[%c1_33, %c0_34] : memref<2x256xf32, #tpu.memory_space<vmem>>, vector<1x256xf32>
    %43 = vector.broadcast %42 : vector<1x256xf32> to vector<4x256xf32>
    %44 = arith.mulf %41, %43 : vector<4x256xf32>
    %c5 = arith.constant 5 : index
    %c0_35 = arith.constant 0 : index
    %c0_36 = arith.constant 0 : index
    %45 = vector.load %arg2[%c5, %c0_35, %c0_36] : memref<9x8x4xf32, #tpu.memory_space<vmem>>, vector<1x8x4xf32>
    %46 = vector.shape_cast %45 : vector<1x8x4xf32> to vector<8x4xf32>
    %cst_37 = arith.constant dense<0.000000e+00> : vector<8x256xf32>
    %47 = tpu.matmul %46, %44, %cst_37 {dimension_numbers = #tpu.dot_dimension_numbers<[1], [0], [0], [1], [0, 0, 1, 1], [], []>} : vector<8x4xf32>, vector<4x256xf32>, vector<8x256xf32> -> vector<8x256xf32>
    %48 = arith.addf %39, %47 : vector<8x256xf32>
    %c0_38 = arith.constant 0 : index
    %c0_39 = arith.constant 0 : index
    %c143 = arith.constant 143 : index
    %49 = vector.load %arg1[%c0_38, %c0_39, %c143] : memref<1x4x512xf32, #tpu.memory_space<vmem>>, vector<1x4x256xf32>
    %50 = vector.shape_cast %49 : vector<1x4x256xf32> to vector<4x256xf32>
    %c0_40 = arith.constant 0 : index
    %c0_41 = arith.constant 0 : index
    %51 = vector.load %arg7[%c0_40, %c0_41] : memref<2x256xf32, #tpu.memory_space<vmem>>, vector<1x256xf32>
    %52 = vector.broadcast %51 : vector<1x256xf32> to vector<4x256xf32>
    %53 = arith.mulf %50, %52 : vector<4x256xf32>
    %c6 = arith.constant 6 : index
    %c0_42 = arith.constant 0 : index
    %c0_43 = arith.constant 0 : index
    %54 = vector.load %arg2[%c6, %c0_42, %c0_43] : memref<9x8x4xf32, #tpu.memory_space<vmem>>, vector<1x8x4xf32>
    %55 = vector.shape_cast %54 : vector<1x8x4xf32> to vector<8x4xf32>
    %cst_44 = arith.constant dense<0.000000e+00> : vector<8x256xf32>
    %56 = tpu.matmul %55, %53, %cst_44 {dimension_numbers = #tpu.dot_dimension_numbers<[1], [0], [0], [1], [0, 0, 1, 1], [], []>} : vector<8x4xf32>, vector<4x256xf32>, vector<8x256xf32> -> vector<8x256xf32>
    %57 = arith.addf %48, %56 : vector<8x256xf32>
    %c0_45 = arith.constant 0 : index
    %c0_46 = arith.constant 0 : index
    %c144 = arith.constant 144 : index
    %58 = vector.load %arg1[%c0_45, %c0_46, %c144] : memref<1x4x512xf32, #tpu.memory_space<vmem>>, vector<1x4x256xf32>
    %59 = vector.shape_cast %58 : vector<1x4x256xf32> to vector<4x256xf32>
    %c7 = arith.constant 7 : index
    %c0_47 = arith.constant 0 : index
    %c0_48 = arith.constant 0 : index
    %60 = vector.load %arg2[%c7, %c0_47, %c0_48] : memref<9x8x4xf32, #tpu.memory_space<vmem>>, vector<1x8x4xf32>
    %61 = vector.shape_cast %60 : vector<1x8x4xf32> to vector<8x4xf32>
    %cst_49 = arith.constant dense<0.000000e+00> : vector<8x256xf32>
    %62 = tpu.matmul %61, %59, %cst_49 {dimension_numbers = #tpu.dot_dimension_numbers<[1], [0], [0], [1], [0, 0, 1, 1], [], []>} : vector<8x4xf32>, vector<4x256xf32>, vector<8x256xf32> -> vector<8x256xf32>
    %63 = arith.addf %57, %62 : vector<8x256xf32>
    %c0_50 = arith.constant 0 : index
    %c0_51 = arith.constant 0 : index
    %c145 = arith.constant 145 : index
    %64 = vector.load %arg1[%c0_50, %c0_51, %c145] : memref<1x4x512xf32, #tpu.memory_space<vmem>>, vector<1x4x256xf32>
    %65 = vector.shape_cast %64 : vector<1x4x256xf32> to vector<4x256xf32>
    %c1_52 = arith.constant 1 : index
    %c0_53 = arith.constant 0 : index
    %66 = vector.load %arg7[%c1_52, %c0_53] : memref<2x256xf32, #tpu.memory_space<vmem>>, vector<1x256xf32>
    %67 = vector.broadcast %66 : vector<1x256xf32> to vector<4x256xf32>
    %68 = arith.mulf %65, %67 : vector<4x256xf32>
    %c8 = arith.constant 8 : index
    %c0_54 = arith.constant 0 : index
    %c0_55 = arith.constant 0 : index
    %69 = vector.load %arg2[%c8, %c0_54, %c0_55] : memref<9x8x4xf32, #tpu.memory_space<vmem>>, vector<1x8x4xf32>
    %70 = vector.shape_cast %69 : vector<1x8x4xf32> to vector<8x4xf32>
    %cst_56 = arith.constant dense<0.000000e+00> : vector<8x256xf32>
    %71 = tpu.matmul %70, %68, %cst_56 {dimension_numbers = #tpu.dot_dimension_numbers<[1], [0], [0], [1], [0, 0, 1, 1], [], []>} : vector<8x4xf32>, vector<4x256xf32>, vector<8x256xf32> -> vector<8x256xf32>
    %72 = arith.addf %63, %71 : vector<8x256xf32>
    %c0_57 = arith.constant 0 : index
    %c0_58 = arith.constant 0 : index
    %73 = vector.load %arg4[%c0_57, %c0_58] : memref<8x1xf32, #tpu.memory_space<vmem>>, vector<8x1xf32>
    %74 = vector.broadcast %73 : vector<8x1xf32> to vector<8x256xf32>
    %75 = arith.mulf %72, %74 : vector<8x256xf32>
    %c0_59 = arith.constant 0 : index
    %c0_60 = arith.constant 0 : index
    %76 = vector.load %arg5[%c0_59, %c0_60] : memref<8x1xf32, #tpu.memory_space<vmem>>, vector<8x1xf32>
    %77 = vector.broadcast %76 : vector<8x1xf32> to vector<8x256xf32>
    %78 = arith.addf %75, %77 : vector<8x256xf32>
    %cst_61 = arith.constant 2.000000e-01 : f32
    %79 = vector.broadcast %cst_61 : f32 to vector<8x256xf32>
    %80 = arith.mulf %79, %78 : vector<8x256xf32>
    %81 = arith.maximumf %78, %80 : vector<8x256xf32>
    %cst_62 = arith.constant 0.000000e+00 : f32
    %82 = vector.broadcast %cst_62 : f32 to vector<8x512xf32>
    %c0_63 = arith.constant 0 : index
    %c0_64 = arith.constant 0 : index
    %83 = vector.load %arg10[%c0_63, %c0_64] : memref<8x512xf32, #tpu.memory_space<vmem>>, vector<8x512xf32>
    tpu.vector_store %arg10[%c0_63, %c0_64], %82 {strides = array<i32>} : memref<8x512xf32, #tpu.memory_space<vmem>>, vector<8x512xf32>,
    %c0_65 = arith.constant 0 : index
    %c128_66 = arith.constant 128 : index
    %84 = vector.load %arg10[%c0_65, %c128_66] : memref<8x512xf32, #tpu.memory_space<vmem>>, vector<8x256xf32>
    tpu.vector_store %arg10[%c0_65, %c128_66], %81 {strides = array<i32>} : memref<8x512xf32, #tpu.memory_space<vmem>>, vector<8x256xf32>,
    %cst_67 = arith.constant 0.000000e+00 : f32
    %85 = vector.broadcast %cst_67 : f32 to vector<8x256xf32>
    %c0_68 = arith.constant 0 : index
    %c111_69 = arith.constant 111 : index
    %86 = vector.load %arg10[%c0_68, %c111_69] : memref<8x512xf32, #tpu.memory_space<vmem>>, vector<8x256xf32>
    %c0_70 = arith.constant 0 : index
    %c0_71 = arith.constant 0 : index
    %87 = vector.load %arg7[%c0_70, %c0_71] : memref<2x256xf32, #tpu.memory_space<vmem>>, vector<1x256xf32>
    %88 = vector.broadcast %87 : vector<1x256xf32> to vector<8x256xf32>
    %89 = arith.mulf %86, %88 : vector<8x256xf32>
    %c0_72 = arith.constant 0 : index
    %c0_73 = arith.constant 0 : index
    %c0_74 = arith.constant 0 : index
    %90 = vector.load %arg3[%c0_72, %c0_73, %c0_74] : memref<9x8x8xf32, #tpu.memory_space<vmem>>, vector<1x8x8xf32>
    %91 = vector.shape_cast %90 : vector<1x8x8xf32> to vector<8x8xf32>
    %cst_75 = arith.constant dense<0.000000e+00> : vector<8x256xf32>
    %92 = tpu.matmul %91, %89, %cst_75 {dimension_numbers = #tpu.dot_dimension_numbers<[1], [0], [0], [1], [0, 0, 1, 1], [], []>} : vector<8x8xf32>, vector<8x256xf32>, vector<8x256xf32> -> vector<8x256xf32>
    %93 = arith.addf %85, %92 : vector<8x256xf32>
    %c0_76 = arith.constant 0 : index
    %c112_77 = arith.constant 112 : index
    %94 = vector.load %arg10[%c0_76, %c112_77] : memref<8x512xf32, #tpu.memory_space<vmem>>, vector<8x256xf32>
    %c1_78 = arith.constant 1 : index
    %c0_79 = arith.constant 0 : index
    %c0_80 = arith.constant 0 : index
    %95 = vector.load %arg3[%c1_78, %c0_79, %c0_80] : memref<9x8x8xf32, #tpu.memory_space<vmem>>, vector<1x8x8xf32>
    %96 = vector.shape_cast %95 : vector<1x8x8xf32> to vector<8x8xf32>
    %cst_81 = arith.constant dense<0.000000e+00> : vector<8x256xf32>
    %97 = tpu.matmul %96, %94, %cst_81 {dimension_numbers = #tpu.dot_dimension_numbers<[1], [0], [0], [1], [0, 0, 1, 1], [], []>} : vector<8x8xf32>, vector<8x256xf32>, vector<8x256xf32> -> vector<8x256xf32>
    %98 = arith.addf %93, %97 : vector<8x256xf32>
    %c0_82 = arith.constant 0 : index
    %c113_83 = arith.constant 113 : index
    %99 = vector.load %arg10[%c0_82, %c113_83] : memref<8x512xf32, #tpu.memory_space<vmem>>, vector<8x256xf32>
    %c1_84 = arith.constant 1 : index
    %c0_85 = arith.constant 0 : index
    %100 = vector.load %arg7[%c1_84, %c0_85] : memref<2x256xf32, #tpu.memory_space<vmem>>, vector<1x256xf32>
    %101 = vector.broadcast %100 : vector<1x256xf32> to vector<8x256xf32>
    %102 = arith.mulf %99, %101 : vector<8x256xf32>
    %c2_86 = arith.constant 2 : index
    %c0_87 = arith.constant 0 : index
    %c0_88 = arith.constant 0 : index
    %103 = vector.load %arg3[%c2_86, %c0_87, %c0_88] : memref<9x8x8xf32, #tpu.memory_space<vmem>>, vector<1x8x8xf32>
    %104 = vector.shape_cast %103 : vector<1x8x8xf32> to vector<8x8xf32>
    %cst_89 = arith.constant dense<0.000000e+00> : vector<8x256xf32>
    %105 = tpu.matmul %104, %102, %cst_89 {dimension_numbers = #tpu.dot_dimension_numbers<[1], [0], [0], [1], [0, 0, 1, 1], [], []>} : vector<8x8xf32>, vector<8x256xf32>, vector<8x256xf32> -> vector<8x256xf32>
    %106 = arith.addf %98, %105 : vector<8x256xf32>
    %c0_90 = arith.constant 0 : index
    %c127_91 = arith.constant 127 : index
    %107 = vector.load %arg10[%c0_90, %c127_91] : memref<8x512xf32, #tpu.memory_space<vmem>>, vector<8x256xf32>
    %c0_92 = arith.constant 0 : index
    %c0_93 = arith.constant 0 : index
    %108 = vector.load %arg7[%c0_92, %c0_93] : memref<2x256xf32, #tpu.memory_space<vmem>>, vector<1x256xf32>
    %109 = vector.broadcast %108 : vector<1x256xf32> to vector<8x256xf32>
    %110 = arith.mulf %107, %109 : vector<8x256xf32>
    %c3_94 = arith.constant 3 : index
    %c0_95 = arith.constant 0 : index
    %c0_96 = arith.constant 0 : index
    %111 = vector.load %arg3[%c3_94, %c0_95, %c0_96] : memref<9x8x8xf32, #tpu.memory_space<vmem>>, vector<1x8x8xf32>
    %112 = vector.shape_cast %111 : vector<1x8x8xf32> to vector<8x8xf32>
    %cst_97 = arith.constant dense<0.000000e+00> : vector<8x256xf32>
    %113 = tpu.matmul %112, %110, %cst_97 {dimension_numbers = #tpu.dot_dimension_numbers<[1], [0], [0], [1], [0, 0, 1, 1], [], []>} : vector<8x8xf32>, vector<8x256xf32>, vector<8x256xf32> -> vector<8x256xf32>
    %114 = arith.addf %106, %113 : vector<8x256xf32>
    %c0_98 = arith.constant 0 : index
    %c128_99 = arith.constant 128 : index
    %115 = vector.load %arg10[%c0_98, %c128_99] : memref<8x512xf32, #tpu.memory_space<vmem>>, vector<8x256xf32>
    %c4_100 = arith.constant 4 : index
    %c0_101 = arith.constant 0 : index
    %c0_102 = arith.constant 0 : index
    %116 = vector.load %arg3[%c4_100, %c0_101, %c0_102] : memref<9x8x8xf32, #tpu.memory_space<vmem>>, vector<1x8x8xf32>
    %117 = vector.shape_cast %116 : vector<1x8x8xf32> to vector<8x8xf32>
    %cst_103 = arith.constant dense<0.000000e+00> : vector<8x256xf32>
    %118 = tpu.matmul %117, %115, %cst_103 {dimension_numbers = #tpu.dot_dimension_numbers<[1], [0], [0], [1], [0, 0, 1, 1], [], []>} : vector<8x8xf32>, vector<8x256xf32>, vector<8x256xf32> -> vector<8x256xf32>
    %119 = arith.addf %114, %118 : vector<8x256xf32>
    %c0_104 = arith.constant 0 : index
    %c129_105 = arith.constant 129 : index
    %120 = vector.load %arg10[%c0_104, %c129_105] : memref<8x512xf32, #tpu.memory_space<vmem>>, vector<8x256xf32>
    %c1_106 = arith.constant 1 : index
    %c0_107 = arith.constant 0 : index
    %121 = vector.load %arg7[%c1_106, %c0_107] : memref<2x256xf32, #tpu.memory_space<vmem>>, vector<1x256xf32>
    %122 = vector.broadcast %121 : vector<1x256xf32> to vector<8x256xf32>
    %123 = arith.mulf %120, %122 : vector<8x256xf32>
    %c5_108 = arith.constant 5 : index
    %c0_109 = arith.constant 0 : index
    %c0_110 = arith.constant 0 : index
    %124 = vector.load %arg3[%c5_108, %c0_109, %c0_110] : memref<9x8x8xf32, #tpu.memory_space<vmem>>, vector<1x8x8xf32>
    %125 = vector.shape_cast %124 : vector<1x8x8xf32> to vector<8x8xf32>
    %cst_111 = arith.constant dense<0.000000e+00> : vector<8x256xf32>
    %126 = tpu.matmul %125, %123, %cst_111 {dimension_numbers = #tpu.dot_dimension_numbers<[1], [0], [0], [1], [0, 0, 1, 1], [], []>} : vector<8x8xf32>, vector<8x256xf32>, vector<8x256xf32> -> vector<8x256xf32>
    %127 = arith.addf %119, %126 : vector<8x256xf32>
    %c0_112 = arith.constant 0 : index
    %c143_113 = arith.constant 143 : index
    %128 = vector.load %arg10[%c0_112, %c143_113] : memref<8x512xf32, #tpu.memory_space<vmem>>, vector<8x256xf32>
    %c0_114 = arith.constant 0 : index
    %c0_115 = arith.constant 0 : index
    %129 = vector.load %arg7[%c0_114, %c0_115] : memref<2x256xf32, #tpu.memory_space<vmem>>, vector<1x256xf32>
    %130 = vector.broadcast %129 : vector<1x256xf32> to vector<8x256xf32>
    %131 = arith.mulf %128, %130 : vector<8x256xf32>
    %c6_116 = arith.constant 6 : index
    %c0_117 = arith.constant 0 : index
    %c0_118 = arith.constant 0 : index
    %132 = vector.load %arg3[%c6_116, %c0_117, %c0_118] : memref<9x8x8xf32, #tpu.memory_space<vmem>>, vector<1x8x8xf32>
    %133 = vector.shape_cast %132 : vector<1x8x8xf32> to vector<8x8xf32>
    %cst_119 = arith.constant dense<0.000000e+00> : vector<8x256xf32>
    %134 = tpu.matmul %133, %131, %cst_119 {dimension_numbers = #tpu.dot_dimension_numbers<[1], [0], [0], [1], [0, 0, 1, 1], [], []>} : vector<8x8xf32>, vector<8x256xf32>, vector<8x256xf32> -> vector<8x256xf32>
    %135 = arith.addf %127, %134 : vector<8x256xf32>
    %c0_120 = arith.constant 0 : index
    %c144_121 = arith.constant 144 : index
    %136 = vector.load %arg10[%c0_120, %c144_121] : memref<8x512xf32, #tpu.memory_space<vmem>>, vector<8x256xf32>
    %c7_122 = arith.constant 7 : index
    %c0_123 = arith.constant 0 : index
    %c0_124 = arith.constant 0 : index
    %137 = vector.load %arg3[%c7_122, %c0_123, %c0_124] : memref<9x8x8xf32, #tpu.memory_space<vmem>>, vector<1x8x8xf32>
    %138 = vector.shape_cast %137 : vector<1x8x8xf32> to vector<8x8xf32>
    %cst_125 = arith.constant dense<0.000000e+00> : vector<8x256xf32>
    %139 = tpu.matmul %138, %136, %cst_125 {dimension_numbers = #tpu.dot_dimension_numbers<[1], [0], [0], [1], [0, 0, 1, 1], [], []>} : vector<8x8xf32>, vector<8x256xf32>, vector<8x256xf32> -> vector<8x256xf32>
    %140 = arith.addf %135, %139 : vector<8x256xf32>
    %c0_126 = arith.constant 0 : index
    %c145_127 = arith.constant 145 : index
    %141 = vector.load %arg10[%c0_126, %c145_127] : memref<8x512xf32, #tpu.memory_space<vmem>>, vector<8x256xf32>
    %c1_128 = arith.constant 1 : index
    %c0_129 = arith.constant 0 : index
    %142 = vector.load %arg7[%c1_128, %c0_129] : memref<2x256xf32, #tpu.memory_space<vmem>>, vector<1x256xf32>
    %143 = vector.broadcast %142 : vector<1x256xf32> to vector<8x256xf32>
    %144 = arith.mulf %141, %143 : vector<8x256xf32>
    %c8_130 = arith.constant 8 : index
    %c0_131 = arith.constant 0 : index
    %c0_132 = arith.constant 0 : index
    %145 = vector.load %arg3[%c8_130, %c0_131, %c0_132] : memref<9x8x8xf32, #tpu.memory_space<vmem>>, vector<1x8x8xf32>
    %146 = vector.shape_cast %145 : vector<1x8x8xf32> to vector<8x8xf32>
    %cst_133 = arith.constant dense<0.000000e+00> : vector<8x256xf32>
    %147 = tpu.matmul %146, %144, %cst_133 {dimension_numbers = #tpu.dot_dimension_numbers<[1], [0], [0], [1], [0, 0, 1, 1], [], []>} : vector<8x8xf32>, vector<8x256xf32>, vector<8x256xf32> -> vector<8x256xf32>
    %148 = arith.addf %140, %147 : vector<8x256xf32>
    %c0_134 = arith.constant 0 : index
    %c0_135 = arith.constant 0 : index
    %149 = vector.load %arg4[%c0_134, %c0_135] : memref<8x1xf32, #tpu.memory_space<vmem>>, vector<8x1xf32>
    %150 = vector.broadcast %149 : vector<8x1xf32> to vector<8x256xf32>
    %151 = arith.mulf %148, %150 : vector<8x256xf32>
    %c0_136 = arith.constant 0 : index
    %c0_137 = arith.constant 0 : index
    %152 = vector.load %arg6[%c0_136, %c0_137] : memref<8x1xf32, #tpu.memory_space<vmem>>, vector<8x1xf32>
    %153 = vector.broadcast %152 : vector<8x1xf32> to vector<8x256xf32>
    %154 = arith.addf %151, %153 : vector<8x256xf32>
    %cst_138 = arith.constant 2.000000e-01 : f32
    %155 = vector.broadcast %cst_138 : f32 to vector<8x256xf32>
    %156 = arith.mulf %155, %154 : vector<8x256xf32>
    %157 = arith.maximumf %154, %156 : vector<8x256xf32>
    %c0_139 = arith.constant 0 : index
    %c128_140 = arith.constant 128 : index
    %158 = vector.load %arg10[%c0_139, %c128_140] : memref<8x512xf32, #tpu.memory_space<vmem>>, vector<8x256xf32>
    tpu.vector_store %arg10[%c0_139, %c128_140], %157 {strides = array<i32>} : memref<8x512xf32, #tpu.memory_space<vmem>>, vector<8x256xf32>,
    %c0_141 = arith.constant 0 : index
    %c128_142 = arith.constant 128 : index
    %159 = vector.load %arg10[%c0_141, %c128_142] : memref<8x512xf32, #tpu.memory_space<vmem>>, vector<8x239xf32>
    %c0_143 = arith.constant 0 : index
    %c129_144 = arith.constant 129 : index
    %160 = vector.load %arg10[%c0_143, %c129_144] : memref<8x512xf32, #tpu.memory_space<vmem>>, vector<8x239xf32>
    %161 = arith.maximumf %159, %160 : vector<8x239xf32>
    %c0_145 = arith.constant 0 : index
    %c144_146 = arith.constant 144 : index
    %162 = vector.load %arg10[%c0_145, %c144_146] : memref<8x512xf32, #tpu.memory_space<vmem>>, vector<8x239xf32>
    %c0_147 = arith.constant 0 : index
    %c145_148 = arith.constant 145 : index
    %163 = vector.load %arg10[%c0_147, %c145_148] : memref<8x512xf32, #tpu.memory_space<vmem>>, vector<8x239xf32>
    %164 = arith.maximumf %162, %163 : vector<8x239xf32>
    %165 = arith.maximumf %161, %164 : vector<8x239xf32>
    %c0_149 = arith.constant 0 : index
    %c0_150 = arith.constant 0 : index
    %166 = vector.load %arg8[%c0_149, %c0_150] : memref<239x64xf32, #tpu.memory_space<vmem>>, vector<239x64xf32>
    %cst_151 = arith.constant dense<0.000000e+00> : vector<8x64xf32>
    %167 = tpu.matmul %165, %166, %cst_151 {dimension_numbers = #tpu.dot_dimension_numbers<[1], [0], [0], [1], [0, 0, 1, 1], [], []>} : vector<8x239xf32>, vector<239x64xf32>, vector<8x64xf32> -> vector<8x64xf32>
    %c0_152 = arith.constant 0 : index
    %c0_153 = arith.constant 0 : index
    %c0_154 = arith.constant 0 : index
    %168 = vector.load %arg9[%c0_152, %c0_153, %c0_154] : memref<1x8x64xf32, #tpu.memory_space<vmem>>, vector<1x8x64xf32>
    %169 = vector.shape_cast %168 : vector<1x8x64xf32> to vector<8x64xf32>
    %170 = vector.shape_cast %167 : vector<8x64xf32> to vector<1x8x64xf32>
    tpu.vector_store %arg9[%c0_152, %c0_153, %c0_154], %170 {strides = array<i32>} : memref<1x8x64xf32, #tpu.memory_space<vmem>>, vector<1x8x64xf32>,
    return
  }
  func.func @transform_0(%arg0: i32) -> (i32, i32, i32) {
    %c0_i32 = arith.constant 0 : i32
    %c0_i32_0 = arith.constant 0 : i32
    %c0_i32_1 = arith.constant 0 : i32
    return %arg0, %c0_i32, %c0_i32_0 : i32, i32, i32
  }
  func.func @transform_1(%arg0: i32) -> (i32, i32, i32) {
    %c0_i32 = arith.constant 0 : i32
    %c0_i32_0 = arith.constant 0 : i32
    %c0_i32_1 = arith.constant 0 : i32
    %c0_i32_2 = arith.constant 0 : i32
    return %c0_i32, %c0_i32_0, %c0_i32_1 : i32, i32, i32
  }
  func.func @transform_2(%arg0: i32) -> (i32, i32, i32) {
    %c0_i32 = arith.constant 0 : i32
    %c0_i32_0 = arith.constant 0 : i32
    %c0_i32_1 = arith.constant 0 : i32
    %c0_i32_2 = arith.constant 0 : i32
    return %c0_i32, %c0_i32_0, %c0_i32_1 : i32, i32, i32
  }
  func.func @transform_3(%arg0: i32) -> (i32, i32) {
    %c0_i32 = arith.constant 0 : i32
    %c0_i32_0 = arith.constant 0 : i32
    %c0_i32_1 = arith.constant 0 : i32
    return %c0_i32, %c0_i32_0 : i32, i32
  }
  func.func @transform_4(%arg0: i32) -> (i32, i32) {
    %c0_i32 = arith.constant 0 : i32
    %c0_i32_0 = arith.constant 0 : i32
    %c0_i32_1 = arith.constant 0 : i32
    return %c0_i32, %c0_i32_0 : i32, i32
  }
  func.func @transform_5(%arg0: i32) -> (i32, i32) {
    %c0_i32 = arith.constant 0 : i32
    %c0_i32_0 = arith.constant 0 : i32
    %c0_i32_1 = arith.constant 0 : i32
    return %c0_i32, %c0_i32_0 : i32, i32
  }
  func.func @transform_6(%arg0: i32) -> (i32, i32) {
    %c0_i32 = arith.constant 0 : i32
    %c0_i32_0 = arith.constant 0 : i32
    %c0_i32_1 = arith.constant 0 : i32
    return %c0_i32, %c0_i32_0 : i32, i32
  }
  func.func @transform_7(%arg0: i32) -> (i32, i32) {
    %c0_i32 = arith.constant 0 : i32
    %c0_i32_0 = arith.constant 0 : i32
    %c0_i32_1 = arith.constant 0 : i32
    return %c0_i32, %c0_i32_0 : i32, i32
  }
  func.func @transform_8(%arg0: i32) -> (i32, i32, i32) {
    %c0_i32 = arith.constant 0 : i32
    %c0_i32_0 = arith.constant 0 : i32
    %c0_i32_1 = arith.constant 0 : i32
    return %arg0, %c0_i32, %c0_i32_0 : i32, i32, i32
  }
}

</mosaic_0001>

<bundles_post_ra>
// kernel: tpu_custom_call.1
= control target key start
LH: loop header
LB: loop body
LE: loop exit
PB: predicated region body
PF: predicated region fallthrough
CT: control target
= control target key end

     0   :  { %13 = vsyncpa [#allocation4], 0  ;;  %s3227_s0 = inlined_call_operand.vmem [shape: f32[2,4,512], index: 0, kind: input, shape index: {}]   ;;  %s3228_s1 = inlined_call_operand.vmem [shape: f32[9,8,4], index: 1, kind: input, shape index: {}]   ;;  %s3229_s2 = inlined_call_operand.vmem [shape: f32[9,8,8], index: 2, kind: input, shape index: {}]   ;;  %s3230_s3 = inlined_call_operand.vmem [shape: f32[8,1], index: 3, kind: input, shape index: {}]   ;;  %s3231_s4 = inlined_call_operand.vmem [shape: f32[8,1], index: 4, kind: input, shape index: {}]   ;;  %s3232_s5 = inlined_call_operand.vmem [shape: f32[8,1], index: 5, kind: input, shape index: {}]   ;;  %s3233_s6 = inlined_call_operand.vmem [shape: f32[2,256], index: 6, kind: input, shape index: {}]   ;;  %s3234_s7 = inlined_call_operand.vmem [shape: f32[239,64], index: 7, kind: input, shape index: {}]   ;;  %s3235_s8 = inlined_call_operand.hbm [shape: f32[2,8,64], index: 8, kind: output, shape index: {}]  }
   0x1   :  { %15 = vsyncpa [#allocation4 + $0x1], 0  ;;  %s2694_s27 = smov 0   ;;  %s2696_s28 = smov 0  }
   0x2   :  { %s2698_s29 = smov 0   ;;  %s2700_s30 = smov 0  }
   0x3 LB: > { %s2715_s9 = sadd.s32 4294967295, %s2634_s30   ;;  %s2371_s10 = sadd.s32 4294967294, %s2634_s30   ;;  %s2634_s30 = sphi %s2700_s30, %s3250_s30   ;;  %s2630_s29 = sphi %s2698_s29, %s3249_s29   ;;  %s2626_s28 = sphi %s2696_s28, %s3248_s28   ;;  %s2622_s27 = sphi %s2694_s27, %s3247_s27  }
   0x4   : > { %s2719_s11 = sadd.s32 1, %s2634_s30   ;;  %s201_s12 = sadd.s32 1, %s2630_s29 }
   0x5   : > { %s198_s13 = ssub.s32 %s2634_s30, %s2719_s11  ;;  %p211_p0 = scmp.ne.s32.totalorder %s2630_s29, %s2626_s28 }
   0x6   : > { %p199_p1 = scmp.eq.s32.totalorder %s198_s13, 0  ;;  %p212_p2 = scmp.eq.s32.totalorder %s2715_s9, 1 }
   0x7   : > { %p217_p3 = scmp.ne.s32.totalorder %s2626_s28, %s2622_s27  ;;  %p218_p4 = scmp.eq.s32.totalorder %s2371_s10, 1 }
   0x8   : > { %s2730_s14 = scalar_select %p199_p1, %s2630_s29, %s201_s12  }
   0x9   : > { %p2732_p5 = por %p212_p2, %p211_p0  ;;  %p2736_p6 = por %p218_p4, %p217_p3 }
   0xa   : > { %p2374_p7 = scmp.ge.s32.totalorder %s2634_s30, 1  ;;  %p265_p8 = scmp.lt.s32.totalorder %s2634_s30, 3 }
   0xc   : > { %p266_p9 = pnand %p2374_p7, %p265_p8 }
   0xd   : > { %v308_v0 = vlaneseq (!%p266_p9)  ;;  %v306_v1 = vld [vmem:[%s3233_s6] ss:$2 sm:$0x3] (!%p266_p9)  ;;  %v2385_v3 = vld [vmem:[%s3233_s6 + $0x1] ss:$2 sm:$0x3] (!%p266_p9) }
   0xe   : > { %269 = sbr.rel (%p266_p9) target bundleno = 1455 (0x5af), region = 52  ;;  %p299_p10 = scmp.lt.s32.totalorder (!%p266_p9), %s2715_s9, 1  ;;  %v2643_v15 = vmov (!%p266_p9), 0.0   ;;  %vm320_vm0 = vcmask (!%p266_p9), 908288   ;;  %vm528_vm1 = vcmask (!%p266_p9), 924672   ;;  %vm633_vm2 = vcmask (!%p266_p9), 1039360  }
   0xf   : > { %v309_v2 = vshrl.u32 (!%p266_p9), %v308_v0, 7  ;;  %s2636_s23 = smov (!%p266_p9), 111   ;;  %s2637_s24 = smov (!%p266_p9), 127   ;;  %414 = vmatprep.mubr.f32.mxu1 (!%p266_p9), %v2643_v15  ;;  %1111 = vmatprep.mubr.f32.mxu0 (!%p266_p9), %v2643_v15  ;;  %vm338_vm3 = vcmask (!%p266_p9), 130048   ;;  %vm345_vm4 = vcmask (!%p266_p9), 1043456   ;;  %v2378_v43 = vld [vmem:[%s3228_s1 + $0x8] sm:$0xff] (!%p266_p9) }
  0x10   : > { %s2638_s12 = smov (!%p266_p9), 113   ;;  %s2639_s13 = smov (!%p266_p9), 1   ;;  %vm341_vm5 = vcmask (!%p266_p9), 31744   ;;  %vm650_vm6 = vcmask (!%p266_p9), 7168   ;;  %vm545_vm7 = vcmask (!%p266_p9), 121856   ;;  %vm430_vm8 = vcmask (!%p266_p9), 138240  }
  0x11   : > { %v2749_v4 = vsub.s32 (!%p266_p9), 0, %v309_v2  ;;  %v2751_v5 = vsub.s32 (!%p266_p9), 1, %v309_v2  ;;  %s2640_s17 = smov (!%p266_p9), 15   ;;  %s3238_s18 = smov (!%p266_p9), 17   ;;  %v2645_v2 = vmov (!%p266_p9), 0   ;;  %vm1037_vm9 = vcmask (!%p266_p9), 916480  }
  0x12   : > { %s3240_s19 = smov (!%p266_p9), 16   ;;  %2569 = vset.pattern.permute.xlu1 (!%p266_p9), %v2645_v2  ;;  %2568 = vset.pattern.permute.xlu0 (!%p266_p9), %v2645_v2  ;;  %s3245_s25 = smov (!%p266_p9), 17   ;;  %vm1289_vm10 = vcmask (!%p266_p9), 64512   ;;  %vm2222_vm11 = vcmask (!%p266_p9), 1046528   ;;  %vm2647_vm12 = vmmov (!%p266_p9), 1   ;;  %vm2296_vm14 = vcmask (!%p266_p9), 523264  }
  0x13   : > { %v311_v6 = vrot.slane (!%p266_p9), %v306_v1, %v2749_v4  ;;  %v315_v7 = vrot.slane (!%p266_p9), %v306_v1, %v2751_v5  ;;  %v519_v8 = vrot.slane (!%p266_p9), %v2385_v3, %v2749_v4  ;;  %v523_v9 = vrot.slane (!%p266_p9), %v2385_v3, %v2751_v5  ;;  %v2832_v3 = vld [vmem:[%s3230_s3] sm:$0xff] (!%p266_p9)  ;;  %vm2483_vm13 = vmpackc.low (!%p266_p9), %vm2222_vm11, %vm2647_vm12 }
  0x15   : > { %s300_s21 = scalar_select %p299_p10, %s2715_s9, 1  ;;  %v316_v10 = vcombine.low %v311_v6, %v315_v7  ;;  %v524_v11 = vcombine.low %v519_v8, %v523_v9  ;;  %v1252_v6 = vld [vmem:[%s3233_s6] ss:$2 sm:$0x3] }
  0x16   : > { %v1261_v7 = vrot.slane %v1252_v6, %v2751_v5  ;;  %v1231_v8 = vld [vmem:[%s3231_s4] sm:$0xff] }
  0x17   : > { %s2438_s22 = sshll.u32 %s300_s21, 4  ;;  %317 = vrot.lane.b32.xlu0 %v316_v10, %s2636_s23  ;;  %630 = vrot.lane.b32.xlu1 %v316_v10, %s2637_s24  ;;  %v2417_v9 = vld [vmem:[%s3233_s6 + $0x1] ss:$2 sm:$0x3] }
  0x18   : > { %s2763_s10 = scalar_lea.vmem %s3227_s0, %s2438_s22  ;;  %s3236_s22 = smov 112  }
  0x19   : > { %v304_v12 = vld [vmem:[%s2763_s10] sm:$0xff]  ;;  %v305_v14 = vld [vmem:[%s2763_s10 + $0x8] sm:$0xf]  ;;  %v819_v48 = vld [vmem:[%s2763_s10 + $0xc] sm:$0xf] }
  0x1a   : > { %v331_v13 = vcombine.high %v304_v12, %v304_v12  ;;  %v512_v33 = vld [vmem:[%s2763_s10 + $0x8] sm:$0xf]  ;;  %v1025_v58 = vld [vmem:[%s2763_s10 + $0xc] sm:$0xf] }
  0x1b   : > { %525 = vrot.lane.b32.xlu0 %v524_v11, %s2638_s12  ;;  %820 = vrot.lane.b32.xlu1 %v524_v11, %s2639_s13  ;;  %v629_v37 = vld [vmem:[%s2763_s10 + $0x8] sm:$0xf]  ;;  %v922_v61 = vld [vmem:[%s2763_s10 + $0xc] sm:$0xf] }
  0x1c   : > { %v2793_v44 = vld [vmem:[%s2763_s10 + $0x4] sm:$0xff]  ;;  %v1121_v0 = vld [vmem:[%s2763_s10 + $0xc] sm:$0xf] }
  0x1d   : > { %v2802_v47 = vcombine.high %v2793_v44, %v2793_v44 }
  0x1f   : > { %923 = vrot.lane.b32.xlu0 %v316_v10, %s2640_s17  ;;  %1122 = vrot.lane.b32.xlu1 %v524_v11, %s3238_s18  ;;  %v1257_v10 = vrot.slane %v1252_v6, %v2749_v4  ;;  %v2849_v11 = vrot.slane %v2417_v9, %v2751_v5 }
  0x23   : > { %334 = vrot.lane.b32.xlu0 %v331_v13, %s3240_s19  ;;  %336 = vrot.lane.b32.xlu1 %v305_v14, %s3240_s19 }
  0x27   : > { %332 = vrot.lane.b32.xlu0 %v304_v12, %s3240_s19 }
  0x89   : > { %v318_v16 = vpop.permute.xlu0 %317  ;;  %v631_v17 = vpop.permute.xlu1 %630 }
  0x8a   : > { %v319_v18 = vrot.slane %v318_v16, 4  ;;  %v632_v25 = vrot.slane %v631_v17, 4 }
  0x8c   : > { %v321_v19 = vsel %vm320_vm0, %v319_v18, %v318_v16  ;;  %v325_v20 = vmul.f32 %v319_v18, %v305_v14  ;;  %v634_v31 = vsel %vm633_vm2, %v632_v25, %v631_v17  ;;  %v638_v40 = vmul.f32 %v632_v25, %v629_v37  ;;  %v326_v17 = vld [vmem:[%s3228_s1] sm:$0xff]  ;;  %v2386_v25 = vld [vmem:[%s3228_s1 + $0x10] sm:$0xff] }
  0x8d   : > { %v324_v21 = vmul.f32 %v321_v19, %v304_v12  ;;  %v526_v22 = vpop.permute.xlu0 %525  ;;  %v821_v23 = vpop.permute.xlu1 %820  ;;  %v637_v34 = vmul.f32 %v634_v31, %v304_v12 }
  0x8e   : > { %v527_v24 = vrot.slane %v526_v22, 4  ;;  %428 = vrot.lane.b32.xlu0 %v325_v20, %s3238_s18  ;;  %v822_v45 = vrot.slane %v821_v23, 4 }
  0x8f   : > { %v423_v26 = vcombine.high %v324_v21, %v324_v21  ;;  %v643_v41 = vcombine.high %v637_v34, %v637_v34 }
  0x90   : > { %v529_v27 = vsel %vm528_vm1, %v527_v24, %v526_v22  ;;  %v533_v39 = vmul.f32 %v527_v24, %v512_v33  ;;  %v823_v49 = vsel %vm650_vm6, %v822_v45, %v821_v23  ;;  %v827_v52 = vmul.f32 %v822_v45, %v819_v48  ;;  %v2398_v48 = vld [vmem:[%s3228_s1 + $0x28] sm:$0xff] }
  0x91   : > { %v532_v28 = vmul.f32 %v529_v27, %v304_v12  ;;  %426 = vrot.lane.b32.xlu1 %v423_v26, %s3238_s18  ;;  %v924_v29 = vpop.permute.xlu0 %923  ;;  %v1123_v30 = vpop.permute.xlu1 %1122  ;;  %v826_v51 = vmul.f32 %v823_v49, %v2793_v44  ;;  %v2855_v12 = vrot.slane %v2417_v9, %v2749_v4 }
  0x92   : > { %v925_v50 = vrot.slane %v924_v29, 4  ;;  %v1124_v54 = vrot.slane %v1123_v30, 4 }
  0x93   : > { %v538_v32 = vcombine.high %v532_v28, %v532_v28  ;;  %v832_v56 = vcombine.high %v826_v51, %v826_v51 }
  0x94   : > { %v926_v53 = vsel %vm545_vm7, %v925_v50, %v924_v29  ;;  %v1125_v57 = vsel %vm430_vm8, %v1124_v54, %v1123_v30  ;;  %v930_v62 = vmul.f32 %v925_v50, %v922_v61  ;;  %v1129_v1 = vmul.f32 %v1124_v54, %v1121_v0  ;;  %v2402_v54 = vld [vmem:[%s3228_s1 + $0x30] sm:$0xff] }
  0x95   : > { %541 = vrot.lane.b32.xlu0 %v538_v32, %s2640_s17  ;;  %424 = vrot.lane.b32.xlu1 %v324_v21, %s3238_s18  ;;  %v335_v35 = vpop.permute.xlu0 %334  ;;  %v337_v36 = vpop.permute.xlu1 %336  ;;  %v929_v55 = vmul.f32 %v926_v53, %v2793_v44  ;;  %v1128_v59 = vmul.f32 %v1125_v57, %v2793_v44  ;;  %s3244_s18 = smov 16   ;;  %v2390_v32 = vld [vmem:[%s3228_s1 + $0x18] sm:$0xff] }
  0x96   : > { %v340_v38 = vsel %vm338_vm3, %v335_v35, %v337_v36 }
  0x97   : > { %2379 = vmatprep.subr.msk.mxu1 %vm345_vm4, %v340_v38  ;;  %v935_v60 = vcombine.high %v929_v55, %v929_v55  ;;  %v1134_v63 = vcombine.high %v1128_v59, %v1128_v59 }
  0x99   : > { %539 = vrot.lane.b32.xlu0 %v532_v28, %s2640_s17  ;;  %543 = vrot.lane.b32.xlu1 %v533_v39, %s2640_s17  ;;  %v333_v42 = vpop.permute.xlu0 %332  ;;  %v2394_v39 = vld [vmem:[%s3228_s1 + $0x20] sm:$0xff] }
  0x9a   : > { %v339_v46 = vsel %vm338_vm3, %v333_v42, %v335_v35 }
  0x9b   : > { %2380 = vmatpush1.msk.msra.mxu1 %vm345_vm4, %v339_v46 }
  0x9c   : > { %2381 = vmatmul.mubr.msk.f32.vlgmr.msra.gmra.mrb[0].mxu1 %vm341_vm5, %v2378_v43 }
  0x9d   : > { %648 = vrot.lane.b32.xlu0 %v638_v40, %s2639_s13  ;;  %646 = vrot.lane.b32.xlu1 %v643_v41, %s2639_s13  ;;  %v2406_v40 = vld [vmem:[%s3228_s1 + $0x38] sm:$0xff] }
  0x9e   : > { %504 = vmatprep.mubr.f32.mxu1 %v2643_v15 }
  0xa1   : > { %1033 = vrot.lane.b32.xlu0 %v2802_v47, %s3236_s22  ;;  %644 = vrot.lane.b32.xlu1 %v637_v34, %s2639_s13 }
  0xa5   : > { %833 = vrot.lane.b32.xlu0 %v826_v51, %s2637_s24  ;;  %837 = vrot.lane.b32.xlu1 %v827_v52, %s2637_s24  ;;  %v2410_v52 = vld [vmem:[%s3228_s1 + $0x40] sm:$0xff] }
  0xa9   : > { %835 = vrot.lane.b32.xlu0 %v832_v56, %s2637_s24  ;;  %1035 = vrot.lane.b32.xlu1 %v1025_v58, %s3236_s22 }
  0xad   : > { %938 = vrot.lane.b32.xlu0 %v935_v60, %s2638_s12  ;;  %1031 = vrot.lane.b32.xlu1 %v2793_v44, %s3236_s22 }
  0xb1   : > { %1137 = vrot.lane.b32.xlu0 %v1134_v63, %s2636_s23  ;;  %940 = vrot.lane.b32.xlu1 %v930_v62, %s2638_s12 }
  0xb5   : > { %936 = vrot.lane.b32.xlu0 %v929_v55, %s2638_s12  ;;  %1139 = vrot.lane.b32.xlu1 %v1129_v1, %s2636_s23 }
  0xb9   : > { %1135 = vrot.lane.b32.xlu1 %v1128_v59, %s2636_s23  ;;  %1226 = vperm.xlu0 %2568, %v2832_v3  }
  0xbd   : > { %1234 = vperm.xlu1 %2569, %v1231_v8   ;;  %1264 = vrot.lane.b32.xlu0 %v1261_v7, %s2636_s23 }
  0xc1   : > { %1262 = vrot.lane.b32.xlu1 %v1257_v10, %s2636_s23  ;;  %1463 = vrot.lane.b32.xlu0 %v2849_v11, %s2638_s12 }
  0xc5   : > { %1461 = vrot.lane.b32.xlu1 %v2855_v12, %s2638_s12  ;;  %1565 = vrot.lane.b32.xlu0 %v1261_v7, %s2637_s24 }
  0xc9   : > { %1563 = vrot.lane.b32.xlu1 %v1257_v10, %s2637_s24  ;;  %1748 = vrot.lane.b32.xlu0 %v2849_v11, %s2639_s13 }
  0xcd   : > { %1746 = vrot.lane.b32.xlu1 %v2855_v12, %s2639_s13  ;;  %1850 = vrot.lane.b32.xlu0 %v1261_v7, %s2640_s17 }
  0xd1   : > { %1848 = vrot.lane.b32.xlu1 %v1257_v10, %s2640_s17 }
  0xd5   : > { %1279 = vrot.lane.b32.xlu1 %v2643_v15, %s3244_s18 }
 0x100   : > { %v429_v4 = vpop.permute.xlu0 %428 }
 0x103   : > { %v427_v5 = vpop.permute.xlu1 %426 }
 0x104   : > { %v432_v13 = vsel %vm430_vm8, %v427_v5, %v429_v4 }
 0x105   : > { %2382 = vmatprep.subr.msk.mxu1 %vm345_vm4, %v432_v13 }
 0x107   : > { %v542_v14 = vpop.permute.xlu0 %541  ;;  %v425_v16 = vpop.permute.xlu1 %424 }
 0x108   : > { %v431_v18 = vsel %vm430_vm8, %v425_v16, %v427_v5 }
 0x109   : > { %2383 = vmatpush1.msk.msra.mxu1 %vm345_vm4, %v431_v18 }
 0x10a   : > { %2384 = vmatmul.mubr.msk.f32.vlgmr.msra.gmra.mrb[0].mxu1 %vm341_vm5, %v326_v17 }
 0x10b   : > { %v540_v19 = vpop.permute.xlu0 %539  ;;  %v544_v20 = vpop.permute.xlu1 %543  ;;  %619 = vmatprep.mubr.f32.mxu1 %v2643_v15 }
 0x10c   : > { %v546_v21 = vsel %vm545_vm7, %v540_v19, %v542_v14  ;;  %v547_v22 = vsel %vm545_vm7, %v542_v14, %v544_v20 }
 0x10d   : > { %2387 = vmatprep.subr.msk.mxu1 %vm345_vm4, %v547_v22 }
 0x10e   : > { %2388 = vmatpush1.msk.msra.mxu1 %vm345_vm4, %v546_v21 }
 0x10f   : > { %v649_v23 = vpop.permute.xlu0 %648  ;;  %v647_v24 = vpop.permute.xlu1 %646 }
 0x110   : > { %v652_v26 = vsel %vm650_vm6, %v647_v24, %v649_v23 }
 0x111   : > { %2391 = vmatprep.subr.msk.mxu1 %vm345_vm4, %v652_v26 }
 0x112   : > { %2389 = vmatmul.mubr.msk.f32.vlgmr.msra.gmra.mrb[0].mxu1 %vm341_vm5, %v2386_v25 }
 0x113   : > { %v1034_v27 = vpop.permute.xlu0 %1033  ;;  %v645_v28 = vpop.permute.xlu1 %644  ;;  %724 = vmatprep.mubr.f32.mxu1 %v2643_v15 }
 0x114   : > { %v651_v29 = vsel %vm650_vm6, %v645_v28, %v647_v24 }
 0x115   : > { %2392 = vmatpush1.msk.msra.mxu1 %vm345_vm4, %v651_v29 }
 0x116   : > { %2395 = vmatprep.subr.msk.mxu1 %vm345_vm4, %v2802_v47 }
 0x117   : > { %v834_v30 = vpop.permute.xlu0 %833  ;;  %v838_v31 = vpop.permute.xlu1 %837 }
 0x11a   : > { %2393 = vmatmul.mubr.msk.f32.vlgmr.msra.gmra.mrb[0].mxu1 %vm341_vm5, %v2390_v32 }
 0x11b   : > { %v836_v33 = vpop.permute.xlu0 %835  ;;  %v1036_v34 = vpop.permute.xlu1 %1035  ;;  %2396 = vmatpush1.msk.msra.mxu1 %vm345_vm4, %v2793_v44  ;;  %809 = vmatprep.mubr.f32.mxu1 %v2643_v15 }
 0x11c   : > { %v840_v35 = vsel %vm633_vm2, %v836_v33, %v838_v31  ;;  %v1039_v36 = vsel %vm1037_vm9, %v1034_v27, %v1036_v34  ;;  %v839_v42 = vsel %vm633_vm2, %v834_v30, %v836_v33 }
 0x11d   : > { %2399 = vmatprep.subr.msk.mxu1 %vm345_vm4, %v840_v35  ;;  %2407 = vmatprep.subr.msk.mxu0 %vm345_vm4, %v1039_v36 }
 0x11f   : > { %v939_v37 = vpop.permute.xlu0 %938  ;;  %v1032_v38 = vpop.permute.xlu1 %1031 }
 0x120   : > { %v1038_v41 = vsel %vm1037_vm9, %v1032_v38, %v1034_v27 }
 0x121   : > { %2408 = vmatpush1.msk.msra.mxu0 %vm345_vm4, %v1038_v41 }
 0x122   : > { %2397 = vmatmul.mubr.msk.f32.vlgmr.msra.gmra.mrb[0].mxu1 %vm341_vm5, %v2394_v39  ;;  %2409 = vmatmul.mubr.msk.f32.vlgmr.msra.gmra.mrb[0].mxu0 %vm341_vm5, %v2406_v40 }
 0x123   : > { %2400 = vmatpush1.msk.msra.mxu1 %vm345_vm4, %v839_v42  ;;  %v1138_v43 = vpop.permute.xlu0 %1137  ;;  %v941_v44 = vpop.permute.xlu1 %940  ;;  %912 = vmatprep.mubr.f32.mxu1 %v2643_v15 }
 0x124   : > { %v943_v45 = vsel %vm528_vm1, %v939_v37, %v941_v44  ;;  %1214 = vmatprep.mubr.f32.mxu0 %v2643_v15 }
 0x125   : > { %2403 = vmatprep.subr.msk.mxu1 %vm345_vm4, %v943_v45 }
 0x127   : > { %v937_v46 = vpop.permute.xlu0 %936  ;;  %v1140_v47 = vpop.permute.xlu1 %1139 }
 0x128   : > { %v942_v49 = vsel %vm528_vm1, %v937_v46, %v939_v37  ;;  %v1142_v50 = vsel %vm320_vm0, %v1138_v43, %v1140_v47 }
 0x129   : > { %2411 = vmatprep.subr.msk.mxu0 %vm345_vm4, %v1142_v50 }
 0x12a   : > { %2401 = vmatmul.mubr.msk.f32.vlgmr.msra.gmra.mrb[0].mxu1 %vm341_vm5, %v2398_v48 }
 0x12b   : > { %2404 = vmatpush1.msk.msra.mxu1 %vm345_vm4, %v942_v49  ;;  %v1136_v51 = vpop.permute.xlu1 %1135  ;;  %1015 = vmatprep.mubr.f32.mxu1 %v2643_v15 }
 0x12c   : > { %v1141_v53 = vsel %vm320_vm0, %v1136_v51, %v1138_v43  ;;  %v2414_v43 = vld [vmem:[%s3229_s2 + $0x8] sm:$0xff] }
 0x12d   : > { %2412 = vmatpush1.msk.msra.mxu0 %vm345_vm4, %v1141_v53 }
 0x12e   : > { %2413 = vmatmul.mubr.msk.f32.vlgmr.msra.gmra.mrb[0].mxu0 %vm341_vm5, %v2410_v52 }
 0x132   : > { %2405 = vmatmul.mubr.msk.f32.vlgmr.msra.gmra.mrb[0].mxu1 %vm341_vm5, %v2402_v54 }
 0x133   : > { %1357 = vmatprep.mubr.f32.mxu1 %v2643_v15 }
 0x138   : > { %v1227_v60 = vpop.permute.xlu0 %1226 }
 0x13c   : > { %v1235_v63 = vpop.permute.xlu1 %1234  ;;  %v1265_v10 = vpop.permute.xlu0 %1264 }
 0x140   : > { %v1263_v4 = vpop.permute.xlu1 %1262  ;;  %v1464_v13 = vpop.permute.xlu0 %1463 }
 0x141   : > { %v1266_v5 = vsel %vm320_vm0, %v1263_v4, %v1265_v10  ;;  %v1270_v19 = vmul.f32 0.0, %v1263_v4  ;;  %v2420_v4 = vld [vmem:[%s3229_s2 + $0x18] sm:$0xff] }
 0x144   : > { %v1462_v14 = vpop.permute.xlu1 %1461 }
 0x145   : > { %v1465_v17 = vsel %vm528_vm1, %v1462_v14, %v1464_v13  ;;  %v1469_v21 = vmul.f32 0.0, %v1462_v14 }
 0x148   : > { %v1564_v22 = vpop.permute.xlu1 %1563 }
 0x149   : > { %v1571_v29 = vmul.f32 0.0, %v1564_v22 }
 0x14c   : > { %v1747_v26 = vpop.permute.xlu1 %1746 }
 0x150   : > { %v1849_v33 = vpop.permute.xlu1 %1848 }
 0x154   : > { %v1280_v39 = vpop.permute.xlu1 %1279 }
 0x201   : > { %v1216_v55 = vpop.f32.mrb[0].mxu0 }
 0x202   : > { %v1218_v56 = vpop.f32.mrb[1].mxu0 }
 0x205   : > { %v1017_v57 = vpop.f32.mrb[0].mxu1 }
 0x206   : > { %v2485_v58 = vadd.f32 %v1216_v55, %v1017_v57  ;;  %v1019_v59 = vpop.f32.mrb[1].mxu1 }
 0x207   : > { %v2486_v61 = vadd.f32 %v1218_v56, %v1019_v59  ;;  %v1273_v56 = vld [vmem:[%s3229_s2] sm:$0xff] }
 0x208   : > { %v1229_v62 = vmul.f32 %v2485_v58, %v1227_v60  ;;  %v2151_v58 = vld [vmem:[%s3232_s5] sm:$0xff] }
 0x209   : > { %v1230_v0 = vmul.f32 %v2486_v61, %v1227_v60 }
 0x20a   : > { %v1237_v1 = vadd.f32 %v1235_v63, %v1229_v62 }
 0x20b   : > { %v1238_v2 = vadd.f32 %v1235_v63, %v1230_v0  ;;  %v2418_v0 = vld [vmem:[%s3229_s2 + $0x10] sm:$0xff] }
 0x20c   : > { %v1239_v6 = vmul.f32 0.2, %v1237_v1 }
 0x20d   : > { %v1240_v7 = vmul.f32 0.2, %v1238_v2 }
 0x20e   : > { %v2940_v8 = vmax.f32 %v1237_v1, %v1239_v6 }
 0x20f   : > { %v2942_v9 = vmax.f32 %v1238_v2, %v1240_v7 }
 0x210   : > { %1281 = vrot.lane.b32.xlu1 %v2940_v8, %s3244_s18  ;;  %v1271_v18 = vmul.f32 %v1266_v5, %v2940_v8  ;;  %v1470_v20 = vmul.f32 %v1465_v17, %v2940_v8  ;;  %v1754_v34 = vmul.f32 %v1747_v26, %v2940_v8  ;;  %v1856_v38 = vmul.f32 %v1849_v33, %v2940_v8 }
 0x211   : > { %1283 = vrot.lane.b32.xlu0 %v2942_v9, %s3244_s18  ;;  %v1272_v16 = vmul.f32 %v1265_v10, %v2942_v9  ;;  %s2435_s18 = sshll.u32 %s2715_s9, 7  ;;  %s2648_s9 = smov [#allocation3]  }
 0x212   : > { %s2576_s19 = sshll.u32 %s2648_s9, 4  ;;  %s2577_s19 = int_to_ptr.vmem [resolvable:$false] %s2576_s19 }
 0x214   : > { %2043 = vrot.lane.b32.xlu1 %v2849_v11, %s3245_s25  ;;  %v1566_v11 = vpop.permute.xlu0 %1565 }
 0x215   : > { %2041 = vrot.lane.b32.xlu0 %v2855_v12, %s3245_s25  ;;  %v1471_v12 = vmul.f32 %v1464_v13, %v2942_v9  ;;  %v1567_v23 = vsel %vm633_vm2, %v1564_v22, %v1566_v11  ;;  %v1573_v24 = vmul.f32 %v1566_v11, %v2942_v9 }
 0x216   : > { %v1572_v27 = vmul.f32 %v1567_v23, %v2940_v8  ;;  %v2426_v23 = vld [vmem:[%s3229_s2 + $0x30] sm:$0xff] }
 0x218   : > { %1371 = vrot.lane.b32.xlu1 %v1272_v16, %s3245_s25  ;;  %v1749_v25 = vpop.permute.xlu0 %1748 }
 0x219   : > { %1369 = vrot.lane.b32.xlu0 %v1271_v18, %s3245_s25  ;;  %v1750_v28 = vsel %vm650_vm6, %v1747_v26, %v1749_v25  ;;  %v1756_v31 = vmul.f32 0.0, %v1749_v25  ;;  %v2428_v25 = vld [vmem:[%s3229_s2 + $0x38] sm:$0xff] }
 0x21a   : > { %v1755_v30 = vmul.f32 %v1750_v28, %v2942_v9 }
 0x21c   : > { %1479 = vrot.lane.b32.xlu1 %v1470_v20, %s2640_s17  ;;  %v1851_v32 = vpop.permute.xlu0 %1850 }
 0x21d   : > { %1367 = vrot.lane.b32.xlu0 %v1270_v19, %s3245_s25  ;;  %v1858_v35 = vmul.f32 0.0, %v1851_v32  ;;  %v1852_v36 = vsel %vm545_vm7, %v1849_v33, %v1851_v32  ;;  %s296_s25 = sand.u32 1, %s2626_s28  }
 0x21e   : > { %v1857_v37 = vmul.f32 %v1852_v36, %v2942_v9 }
 0x220   : > { %1477 = vrot.lane.b32.xlu1 %v1469_v21, %s2640_s17 }
 0x221   : > { %1481 = vrot.lane.b32.xlu0 %v1471_v12, %s2640_s17  ;;  %s3246_s17 = smov 112  }
 0x224   : > { %1583 = vrot.lane.b32.xlu1 %v1573_v24, %s2639_s13 }
 0x225   : > { %1581 = vrot.lane.b32.xlu0 %v1572_v27, %s2639_s13 }
 0x228   : > { %1764 = vrot.lane.b32.xlu1 %v1755_v30, %s2637_s24  ;;  %v2430_v30 = vld [vmem:[%s3229_s2 + $0x40] sm:$0xff] }
 0x229   : > { %1579 = vrot.lane.b32.xlu0 %v1571_v29, %s2639_s13  ;;  %s2375_s13 = sshll.u32 %s296_s25, 3 }
 0x22c   : > { %1762 = vrot.lane.b32.xlu1 %v1754_v34, %s2637_s24  ;;  %v2190_v34 = vld [vmem:[%s3234_s7 + $0x8] sm:$0xff] }
 0x22d   : > { %1766 = vrot.lane.b32.xlu0 %v1756_v31, %s2637_s24 }
 0x230   : > { %1868 = vrot.lane.b32.xlu1 %v1858_v35, %s2638_s12  ;;  %v2191_v35 = vld [vmem:[%s3234_s7 + $0x10] sm:$0xff] }
 0x231   : > { %1866 = vrot.lane.b32.xlu0 %v1857_v37, %s2638_s12 }
 0x234   : > { %1957 = vrot.lane.b32.xlu1 %v2942_v9, %s3246_s17 }
 0x235   : > { %1864 = vrot.lane.b32.xlu0 %v1856_v38, %s2638_s12  ;;  %v2646_v38 = vmov 0.0|0.0   ;;  %s298_s12 = scalar_lea.vmem [#allocation3], %s2375_s13 }
 0x236   : > { %2439 = vmatprep.subr.bf16.mxu0 %v2646_v38  ;;  %s2312_s26 = sshll.u32 %s298_s12, 4  ;;  %s3187_s26 = int_to_ptr.vmem [resolvable:$true] %s2312_s26 }
 0x237   : > { %s2572_s10 = scalar_lea.vmem %s3187_s26, 128  ;;  %p2579_p0 = scmp.lt.s32.totalorder %s3187_s26, %s2577_s19 }
 0x238   : > { %1955 = vrot.lane.b32.xlu1 %v2940_v8, %s3246_s17  ;;  %p2573_p11 = scmp.ne.s32.totalorder %s3187_s26, %s2572_s10 }
 0x239   : > { %1959 = vrot.lane.b32.xlu0 %v2643_v15, %s3246_s17 }
 0x23a   : > { %p2574_p12 = pnand %p2573_p11, %p2732_p5 }
 0x23c   : > { %p2575_p13 = pneg %p2574_p12 }
 0x282   : > { %v1282_v40 = vpop.permute.xlu1 %1281 }
 0x283   : > { %v1284_v41 = vpop.permute.xlu0 %1283  ;;  %v1285_v44 = vsel %vm338_vm3, %v1280_v39, %v1282_v40 }
 0x284   : > { %v1286_v42 = vsel %vm338_vm3, %v1282_v40, %v1284_v41  ;;  %v2192_v40 = vld [vmem:[%s3234_s7 + $0x18] sm:$0xff] }
 0x285   : > { %1293 = vmatprep.subr.mxu1 %v1286_v42 }
 0x286   : > { %1294 = vmatpush1.msra.mxu1 %v1285_v44  ;;  %v2044_v45 = vpop.permute.xlu1 %2043  ;;  %v2443_v44 = vpack.c.bf16 %v2192_v40, %v2191_v35 }
 0x287   : > { %v2051_v46 = vmul.f32 0.0, %v2044_v45  ;;  %v2042_v47 = vpop.permute.xlu0 %2041  ;;  %2415 = vmatmul.mubr.msk.f32.vlgmr.msra.gmra.mrb[2].mxu1 %vm1289_vm10, %v2414_v43 }
 0x288   : > { %v2045_v48 = vsel %vm430_vm8, %v2042_v47, %v2044_v45  ;;  %1444 = vmatprep.mubr.f32.mxu1 %v2643_v15  ;;  %v2049_v53 = vmul.f32 %v2042_v47, %v2940_v8  ;;  %v2194_v47 = vld [vmem:[%s3234_s7 + $0x28] sm:$0xff] }
 0x289   : > { %v2050_v49 = vmul.f32 %v2045_v48, %v2942_v9  ;;  %2061 = vrot.lane.b32.xlu1 %v2051_v46, %s2636_s23  ;;  %v2193_v46 = vld [vmem:[%s3234_s7 + $0x20] sm:$0xff] }
 0x28a   : > { %v1372_v50 = vpop.permute.xlu1 %1371 }
 0x28b   : > { %v1370_v51 = vpop.permute.xlu0 %1369  ;;  %2059 = vrot.lane.b32.xlu0 %v2050_v49, %s2636_s23 }
 0x28c   : > { %v1374_v52 = vsel %vm430_vm8, %v1370_v51, %v1372_v50 }
 0x28d   : > { %2146 = vperm.xlu1 %2569, %v2832_v3   ;;  %1380 = vmatprep.subr.mxu1 %v1374_v52 }
 0x28e   : > { %v1480_v54 = vpop.permute.xlu1 %1479 }
 0x28f   : > { %v1368_v55 = vpop.permute.xlu0 %1367  ;;  %2057 = vrot.lane.b32.xlu0 %v2049_v53, %s2636_s23  ;;  %v2195_v53 = vld [vmem:[%s3234_s7 + $0x30] sm:$0xff]  ;;  %s2299_s23 = scalar_lea.sflag [#allocation4], %s296_s25 }
 0x290   : > { %v1373_v57 = vsel %vm430_vm8, %v1368_v55, %v1370_v51  ;;  %v2446_v51 = vpack.c.bf16 %v2194_v47, %v2193_v46 }
 0x291   : > { %1381 = vmatpush1.msra.mxu1 %v1373_v57  ;;  %v2198_v57 = vld [vmem:[%s3234_s7 + $0x48] sm:$0xff] }
 0x292   : > { %2416 = vmatmul.mubr.msk.f32.vlgmr.msra.gmra.mrb[2].mxu1 %vm1289_vm10, %v1273_v56  ;;  %v1478_v59 = vpop.permute.xlu1 %1477  ;;  %v2197_v56 = vld [vmem:[%s3234_s7 + $0x40] sm:$0xff] }
 0x293   : > { %v1482_v3 = vpop.permute.xlu0 %1481  ;;  %2154 = vperm.xlu0 %2568, %v2151_v58   ;;  %1554 = vmatprep.mubr.f32.mxu1 %v2643_v15  ;;  %v1483_v61 = vsel %vm545_vm7, %v1478_v59, %v1480_v54  ;;  %v2452_v58 = vpack.c.bf16 %v2198_v57, %v2197_v56  ;;  %v2199_v59 = vld [vmem:[%s3234_s7 + $0x50] sm:$0xff] }
 0x294   : > { %v1484_v60 = vsel %vm545_vm7, %v1480_v54, %v1482_v3  ;;  %v2196_v54 = vld [vmem:[%s3234_s7 + $0x38] sm:$0xff] }
 0x295   : > { %1490 = vmatprep.subr.mxu1 %v1484_v60  ;;  %v2449_v55 = vpack.c.bf16 %v2196_v54, %v2195_v53  ;;  %v2200_v3 = vld [vmem:[%s3234_s7 + $0x58] sm:$0xff] }
 0x296   : > { %1491 = vmatpush1.msra.mxu1 %v1483_v61  ;;  %v1584_v62 = vpop.permute.xlu1 %1583  ;;  %v2455_v60 = vpack.c.bf16 %v2200_v3, %v2199_v59  ;;  %v2201_v61 = vld [vmem:[%s3234_s7 + $0x60] sm:$0xff] }
 0x297   : > { %v1582_v63 = vpop.permute.xlu0 %1581 }
 0x298   : > { %v1586_v1 = vsel %vm650_vm6, %v1582_v63, %v1584_v62  ;;  %v2202_v62 = vld [vmem:[%s3234_s7 + $0x68] sm:$0xff] }
 0x299   : > { %1592 = vmatprep.subr.mxu1 %v1586_v1  ;;  %v2204_v1 = vld [vmem:[%s3234_s7 + $0x78] sm:$0xff] }
 0x29a   : > { %2419 = vmatmul.mubr.msk.f32.vlgmr.msra.gmra.mrb[2].mxu1 %vm1289_vm10, %v2418_v0  ;;  %v1765_v6 = vpop.permute.xlu1 %1764  ;;  %v2203_v0 = vld [vmem:[%s3234_s7 + $0x70] sm:$0xff] }
 0x29b   : > { %v1580_v2 = vpop.permute.xlu0 %1579  ;;  %1656 = vmatprep.mubr.f32.mxu1 %v2643_v15 }
 0x29c   : > { %v1585_v7 = vsel %vm650_vm6, %v1580_v2, %v1582_v63  ;;  %v2458_v63 = vpack.c.bf16 %v2202_v62, %v2201_v61  ;;  %v2461_v2 = vpack.c.bf16 %v2204_v1, %v2203_v0 }
 0x29d   : > { %1593 = vmatpush1.msra.mxu1 %v1585_v7  ;;  %v2206_v7 = vld [vmem:[%s3234_s7 + $0x88] sm:$0xff] }
 0x29e   : > { %1670 = vmatprep.subr.mxu1 %v2942_v9  ;;  %v1763_v5 = vpop.permute.xlu1 %1762  ;;  %v2422_v9 = vld [vmem:[%s3229_s2 + $0x20] sm:$0xff] }
 0x29f   : > { %v1767_v10 = vpop.permute.xlu0 %1766  ;;  %v1768_v17 = vsel %vm633_vm2, %v1763_v5, %v1765_v6  ;;  %v2208_v5 = vld [vmem:[%s3234_s7 + $0x98] sm:$0xff] }
 0x2a0   : > { %v1769_v13 = vsel %vm633_vm2, %v1765_v6, %v1767_v10  ;;  %v2205_v6 = vld [vmem:[%s3234_s7 + $0x80] sm:$0xff] }
 0x2a1   : > { %v2464_v10 = vpack.c.bf16 %v2206_v7, %v2205_v6 }
 0x2a2   : > { %2421 = vmatmul.mubr.msk.f32.vlgmr.msra.gmra.mrb[2].mxu1 %vm1289_vm10, %v2420_v4  ;;  %v1869_v16 = vpop.permute.xlu1 %1868  ;;  %v2207_v4 = vld [vmem:[%s3234_s7 + $0x90] sm:$0xff] }
 0x2a3   : > { %1671 = vmatpush1.msra.mxu1 %v2940_v8  ;;  %1734 = vmatprep.mubr.f32.mxu1 %v2643_v15  ;;  %v1867_v14 = vpop.permute.xlu0 %1866  ;;  %v2424_v8 = vld [vmem:[%s3229_s2 + $0x28] sm:$0xff] }
 0x2a4   : > { %1775 = vmatprep.subr.mxu1 %v1769_v13  ;;  %v1871_v19 = vsel %vm528_vm1, %v1867_v14, %v1869_v16  ;;  %v2467_v13 = vpack.c.bf16 %v2208_v5, %v2207_v4 }
 0x2a6   : > { %v1958_v21 = vpop.permute.xlu1 %1957 }
 0x2a7   : > { %v1865_v18 = vpop.permute.xlu0 %1864 }
 0x2a8   : > { %v1870_v11 = vsel %vm528_vm1, %v1865_v18, %v1867_v14  ;;  %v2209_v14 = vld [vmem:[%s3234_s7 + $0xa0] sm:$0xff]  ;;  %v2212_v18 = vld [vmem:[%s3234_s7 + $0xb8] sm:$0xff] }
 0x2aa   : > { %2423 = vmatmul.mubr.msk.f32.vlgmr.msra.gmra.mrb[2].mxu1 %vm1289_vm10, %v2422_v9  ;;  %v1956_v12 = vpop.permute.xlu1 %1955  ;;  %v2210_v9 = vld [vmem:[%s3234_s7 + $0xa8] sm:$0xff] }
 0x2ab   : > { %1776 = vmatpush1.msra.mxu1 %v1768_v17  ;;  %1839 = vmatprep.mubr.f32.mxu1 %v2643_v15  ;;  %v1960_v20 = vpop.permute.xlu0 %1959  ;;  %v1961_v24 = vsel %vm1037_vm9, %v1956_v12, %v1958_v21  ;;  %v2470_v16 = vpack.c.bf16 %v2210_v9, %v2209_v14  ;;  %v2211_v17 = vld [vmem:[%s3234_s7 + $0xb0] sm:$0xff] }
 0x2ac   : > { %1877 = vmatprep.subr.mxu1 %v1871_v19  ;;  %v1962_v22 = vsel %vm1037_vm9, %v1958_v21, %v1960_v20  ;;  %v2473_v19 = vpack.c.bf16 %v2212_v18, %v2211_v17  ;;  %v2214_v20 = vld [vmem:[%s3234_s7 + $0xc8] sm:$0xff] }
 0x2b2   : > { %2425 = vmatmul.mubr.msk.f32.vlgmr.msra.gmra.mrb[2].mxu1 %vm1289_vm10, %v2424_v8  ;;  %v2213_v8 = vld [vmem:[%s3234_s7 + $0xc0] sm:$0xff] }
 0x2b3   : > { %1878 = vmatpush1.msra.mxu1 %v1870_v11  ;;  %1941 = vmatprep.mubr.f32.mxu1 %v2643_v15  ;;  %v2476_v21 = vpack.c.bf16 %v2214_v20, %v2213_v8  ;;  %v2215_v11 = vld [vmem:[%s3234_s7 + $0xd0] sm:$0xff] }
 0x2b4   : > { %1968 = vmatprep.subr.mxu1 %v1962_v22  ;;  %v2216_v22 = vld [vmem:[%s3234_s7 + $0xd8] sm:$0xff] }
 0x2b5   : > { %v2479_v12 = vpack.c.bf16 %v2216_v22, %v2215_v11 }
 0x2ba   : > { %2427 = vmatmul.mubr.msk.f32.vlgmr.msra.gmra.mrb[2].mxu1 %vm1289_vm10, %v2426_v23  ;;  %v2217_v23 = vld [vmem:[%s3234_s7 + $0xe0] sm:$0xff] }
 0x2bb   : > { %1969 = vmatpush1.msra.mxu1 %v1961_v24  ;;  %2032 = vmatprep.mubr.f32.mxu1 %v2643_v15  ;;  %v2218_v24 = vld [vmem:[%s3234_s7 + $0xe8] sm:$0x7f] }
 0x2c2   : > { %2429 = vmatmul.mubr.msk.f32.vlgmr.msra.gmra.mrb[2].mxu1 %vm1289_vm10, %v2428_v25  ;;  %v2482_v25 = vpack.c.bf16 %v2218_v24, %v2217_v23 }
 0x2c3   : > { %2134 = vmatprep.mubr.f32.mxu1 %v2643_v15  ;;  %v2189_v15 = vld [vmem:[%s3234_s7] sm:$0xff] }
 0x2c4   : > { %v2440_v39 = vpack.c.bf16 %v2190_v34, %v2189_v15 }
 0x2c6   : > { %2441 = vmatpush1.bf16.msra.mxu0 %v2440_v39 }
 0x2c7   : > { %2442 = vmatprep.subr.bf16.mxu0 %v2646_v38 }
 0x2ca   : > { %2444 = vmatpush1.bf16.msra.mxu0 %v2443_v44 }
 0x2cb   : > { %2445 = vmatprep.subr.bf16.mxu0 %v2646_v38 }
 0x2ce   : > { %2447 = vmatpush1.bf16.msra.mxu0 %v2446_v51 }
 0x2cf   : > { %2448 = vmatprep.subr.bf16.mxu0 %v2646_v38 }
 0x2d2   : > { %2450 = vmatpush1.bf16.msra.mxu0 %v2449_v55 }
 0x2d3   : > { %2451 = vmatprep.subr.bf16.mxu0 %v2646_v38 }
 0x2d6   : > { %2453 = vmatpush1.bf16.msra.mxu0 %v2452_v58 }
 0x2d7   : > { %2454 = vmatprep.subr.bf16.mxu0 %v2646_v38 }
 0x2da   : > { %2456 = vmatpush1.bf16.msra.mxu0 %v2455_v60 }
 0x2db   : > { %2457 = vmatprep.subr.bf16.mxu0 %v2646_v38 }
 0x2de   : > { %2459 = vmatpush1.bf16.msra.mxu0 %v2458_v63 }
 0x2df   : > { %2460 = vmatprep.subr.bf16.mxu0 %v2646_v38 }
 0x2e2   : > { %2462 = vmatpush1.bf16.msra.mxu0 %v2461_v2 }
 0x2e3   : > { %2463 = vmatprep.subr.bf16.mxu0 %v2646_v38 }
 0x2e6   : > { %2465 = vmatpush1.bf16.msra.mxu0 %v2464_v10 }
 0x2e7   : > { %2466 = vmatprep.subr.bf16.mxu0 %v2646_v38 }
 0x2ea   : > { %2468 = vmatpush1.bf16.msra.mxu0 %v2467_v13 }
 0x2eb   : > { %2469 = vmatprep.subr.bf16.mxu0 %v2646_v38 }
 0x2ee   : > { %2471 = vmatpush1.bf16.msra.mxu0 %v2470_v16 }
 0x2ef   : > { %2472 = vmatprep.subr.bf16.mxu0 %v2646_v38 }
 0x2f2   : > { %2474 = vmatpush1.bf16.msra.mxu0 %v2473_v19 }
 0x2f3   : > { %2475 = vmatprep.subr.bf16.mxu0 %v2646_v38 }
 0x2f6   : > { %2477 = vmatpush1.bf16.msra.mxu0 %v2476_v21 }
 0x2f7   : > { %2478 = vmatprep.subr.bf16.mxu0 %v2646_v38 }
 0x2fa   : > { %2480 = vmatpush1.bf16.msra.mxu0 %v2479_v12 }
 0x2fb   : > { %v2062_v26 = vpop.permute.xlu1 %2061  ;;  %2481 = vmatprep.subr.bf16.mxu0 %v2646_v38 }
 0x2fd   : > { %v2060_v27 = vpop.permute.xlu0 %2059 }
 0x2fe   : > { %v2064_v28 = vsel %vm320_vm0, %v2060_v27, %v2062_v26  ;;  %2484 = vmatpush1.bf16.msk.msra.mxu0 %vm2483_vm13, %v2482_v25 }
 0x2ff   : > { %2070 = vmatprep.subr.mxu1 %v2064_v28 }
 0x301   : > { %v2058_v29 = vpop.permute.xlu0 %2057 }
 0x302   : > { %v2063_v31 = vsel %vm320_vm0, %v2058_v29, %v2060_v27 }
 0x303   : > { %2071 = vmatpush1.msra.mxu1 %v2063_v31 }
 0x304   : > { %2431 = vmatmul.mubr.msk.f32.vlgmr.msra.gmra.mrb[2].mxu1 %vm1289_vm10, %v2430_v30 }
 0x30c   : > { %v2147_v32 = vpop.permute.xlu1 %2146 }
 0x312   : > { %v2155_v41 = vpop.permute.xlu0 %2154 }
 0x3d7   : > { %v2136_v33 = vpop.f32.mrb[2].mxu1 }
 0x3d8   : > { %v2149_v36 = vmul.f32 %v2147_v32, %v2136_v33  ;;  %v2138_v37 = vpop.f32.mrb[3].mxu1 }
 0x3d9   : > { %v2150_v42 = vmul.f32 %v2147_v32, %v2138_v37 }
 0x3da   : > { %v2157_v43 = vadd.f32 %v2155_v41, %v2149_v36 }
 0x3db   : > { %v2158_v45 = vadd.f32 %v2155_v41, %v2150_v42 }
 0x3dc   : > { %v2159_v48 = vmul.f32 0.2, %v2157_v43 }
 0x3dd   : > { %v2160_v49 = vmul.f32 0.2, %v2158_v45 }
 0x3de   : > { %v3080_v50 = vmax.f32 %v2157_v43, %v2159_v48 }
 0x3df   : > { %v3082_v52 = vmax.f32 %v2158_v45, %v2160_v49 }
 0x3e0   : > { %2169 = vrot.lane.b32.xlu1 %v3080_v50, %s2637_s24 }
 0x3e1   : > { %2171 = vrot.lane.b32.xlu0 %v3082_v52, %s2637_s24  ;;  %s2578_s24 = scalar_lea.vmem %s2577_s19, 256 }
 0x3e2   : > { %p2580_p1 = scmp.lt.s32.totalorder %s2578_s24, %s2572_s10 }
 0x3e4   : > { %p2581_p2 = por %p2580_p1, %p2579_p0 }
 0x3e6   : > { %p2582_p3 = pnand %p2581_p2, %p2575_p13 }
 0x452   : > { %v2170_v26 = vpop.permute.xlu1 %2169 }
 0x453   : > { %v2172_v27 = vpop.permute.xlu0 %2171 }
 0x454   : > { %v2173_v28 = vsel %vm633_vm2, %v2170_v26, %v2172_v27  ;;  %v2177_v29 = vmax.f32 %v3082_v52, %v2172_v27 }
 0x455   : > { %v2176_v30 = vmax.f32 %v3080_v50, %v2173_v28 }
 0x456   : > { %2182 = vrot.lane.b32.xlu0 %v2177_v29, %s3246_s17 }
 0x457   : > { %2180 = vrot.lane.b32.xlu1 %v2176_v30, %s3246_s17  ;;  %s3185_s17 = scalar_lea.hbm %s3235_s8, %s2435_s18 }
 0x4c8   : > { %v2183_v31 = vpop.permute.xlu0 %2182 }
 0x4c9   : > { %v2188_v32 = vmax.f32 %v2177_v29, %v2183_v31  ;;  %v2181_v33 = vpop.permute.xlu1 %2180 }
 0x4ca   : > { %v2184_v15 = vsel %vm1037_vm9, %v2181_v33, %v2183_v31 }
 0x4cb   : > { %v2187_v34 = vmax.f32 %v2176_v30, %v2184_v15  ;;  %2433 = vmatprep.mubr.msk.f32.mxu0 %vm320_vm0, %v2188_v32 }
 0x4cd   : > { %2291 = vmatmul.mubr.f32.vlgmr.msra.gmra.mrb[2].mxu0 %v2187_v34 }
 0x5a0   : > { %v2292_v35 = vpop.f32.mrb[2].mxu0 }
 0x5a1   : > { %2297 = vst.msk [vmem:[%s298_s12] sm:$0xff] %vm2296_vm14, %v2292_v35  ;;  %v2294_v36 = vpop.f32.mrb[3].mxu0 }
 0x5a2   : > { %2585 = shalt.err (!%p2582_p3)
}
 0x5a3   : > { %s2586_s22 = scalar_lea.hbm %s3185_s17, 128  ;;  %s2590_s18 = scalar_lea.hbm %s3235_s8, 256 }
 0x5a4   : > { %p2587_p4 = scmp.ne.s32.totalorder %s3185_s17, %s2586_s22  ;;  %p2591_p9 = scmp.lt.u32.totalorder %s3185_s17, %s3235_s8 }
 0x5a5   : > { %p2592_p10 = scmp.lt.u32.totalorder %s2590_s18, %s2586_s22  ;;  %p2594_p12 = scmp.lt.u32.totalorder %s2586_s22, %s3185_s17 }
 0x5a6   : > { %p2588_p7 = pnand %p2587_p4, %p2732_p5 }
 0x5a7   : > { %p2593_p11 = por %p2592_p10, %p2591_p9 }
 0x5a8   : > { %p2589_p8 = pneg %p2588_p7 }
 0x5a9   : > { %p2595_p13 = por %p2594_p12, %p2593_p11 }
 0x5ab   : > { %p2596_p0 = pnand %p2595_p13, %p2589_p8 }
 0x5ad   : > { %2599 = shalt.err (!%p2596_p0)
}
 0x5ae   : > { %2517 = dma.vmem_to_hbm [thread:$0]  (%p2732_p5), %s3187_s26, 128, %s3185_s17, %s2299_s23  }
 0x5af PF: > { %p2523_p1 = scmp.ge.s32.totalorder %s2634_s30, 2  ;;  %s2324_s21 = sand.u32 1, %s2622_s27  }
 0x5b0   : > { %s2325_s10 = scalar_lea.sflag [#allocation4], %s2324_s21 }
 0x5b1   : > { %p2520_p2 = pnand %p2523_p1, %p2736_p6 }
 0x5b3   : > { %2617 = dma.done.wait (!%p2520_p2), %s2325_s10, 128  }
 0x5b4   : > { %2619 = vsyncadd (!%p2520_p2), %s2325_s10, 4294967168  ;;  %p18_p3 = scmp.ge.s32.totalorder %s2719_s11, 4   ;;  %s3247_s27 = smov %s2626_s28 }
 0x5b5   : > { %s3248_s28 = smov %s2630_s29  ;;  %s3249_s29 = smov %s2730_s14 }
 0x5b6   : > { %s3250_s30 = smov %s2719_s11  ;;  %20 = sbr.rel (!%p18_p3) target bundleno = 3 (0x3), region = 104 }
 0x5bd   :  { %2330 = vsyncpa [#allocation4], 1 }
 0x5be   :  { %2332 = vsyncpa [#allocation4 + $0x1], 1 }

</bundles_post_ra>
